<compile_context>
chip_gen: v5e
topology: v5e:2x2
jax: 0.10.0
libtpu: 0.0.40
codegen_flags: <defaults>
</compile_context>

<pallas_src>
import functools

import numpy as np
import jax
import jax.numpy as jnp
from jax.experimental import pallas as pl
from jax.experimental.pallas import tpu as pltpu

ROW_ALIGN = 16  # bf16 sublane tile


def _round_up(n: int, m: int) -> int:
    return ((n + m - 1) // m) * m


@functools.lru_cache(maxsize=None)
def _avg_matrix_t(way: int, shot: int, n_sup_pad: int, way_pad: int):
    """(n_sup_pad, way_pad) bf16 class-indicator matrix, pre-transposed.
    Per the spec's compute_prototypes (support.reshape(shot, way, -1).mean(0)),
    support row r belongs to class r % way. Entries are 0/1 (exact in bf16);
    the 1/shot mean scale is applied in f32 inside the kernel."""
    n_support = shot * way
    r = np.arange(n_sup_pad)[:, None]
    c = np.arange(way_pad)[None, :]
    m = ((r < n_support) & (c < way) & (r % way == c)).astype(np.float32)
    return jnp.asarray(m, dtype=jnp.bfloat16)


def pn_kernel(sup_ref, qry_ref, w_ref, b_ref, avgt_ref, out_ref, *, way, inv_shot):
    """sup_ref:  (TB, n_sup_pad, K_pad)  bf16  flattened support images
       qry_ref:  (TB, q_pad,    K_pad)   bf16  flattened query images
       w_ref:    (K_pad, D_pad)          bf16  synthetic baseModel weight
       b_ref:    (1, D_pad)              f32   synthetic baseModel bias
       avgt_ref: (n_sup_pad, way_pad)    bf16  class-indicator matrix (transposed)
       out_ref:  (TB, q_pad, way_pad)    f32   per-task log-softmax'd distances."""
    tb, n_sup_pad, k_pad = sup_ref.shape
    q_pad = qry_ref.shape[1]
    d_pad = w_ref.shape[1]
    way_pad = avgt_ref.shape[1]

    w = w_ref[...]
    b = b_ref[...]

    # ---- 1. baseModel: linear + ReLU (bf16 MXU operands, f32 accum/elementwise).
    #         The TB tasks' rows are stacked so the MXU sees M = TB*rows. ----
    sup_emb = jnp.dot(sup_ref[...].reshape(tb * n_sup_pad, k_pad), w,
                      preferred_element_type=jnp.float32)
    sup_emb = jnp.maximum(sup_emb + b, 0.0)
    sup_b = sup_emb.astype(jnp.bfloat16).reshape(tb, n_sup_pad, d_pad)

    qry_emb = jnp.dot(qry_ref[...].reshape(tb * q_pad, k_pad), w,
                      preferred_element_type=jnp.float32)
    qry_emb = jnp.maximum(qry_emb + b, 0.0)
    qry_b = qry_emb.astype(jnp.bfloat16).reshape(tb, q_pad, d_pad)

    # ---- 2. compute_prototypes, produced TRANSPOSED: protos_T[t] = sup_b[t]^T @ avgT
    #         (bf16 MXU, f32 accumulation), then the exact 1/shot mean in f32. ----
    avgt = jnp.broadcast_to(avgt_ref[...], (tb, n_sup_pad, way_pad))
    protos_t = jnp.einsum('tnd,tnw->tdw', sup_b, avgt,
                          preferred_element_type=jnp.float32)   # (TB, D, way_pad) f32
    p_b = (protos_t * inv_shot).astype(jnp.bfloat16)            # protos_t dies here

    # ---- 3. ||p||^2 as a sublane reduce on the XLU (no f32-operand MXU matmul),
    #         from the same bf16-quantized prototypes fed to the distance matmul. ----
    p32 = p_b.astype(jnp.float32)
    p_sq = jnp.sum(p32 * p32, axis=1, keepdims=True)            # (TB, 1, way_pad)

    # ---- 4. euclidean_metric: -||q-p||^2 = 2 q.p - ||p||^2 - ||q||^2; the per-row
    #         ||q||^2 is constant over classes and cancels in log_softmax.
    #         q.p is the canonical batched (M,K)@(K,N) matmul. ----
    qp = jnp.einsum('tqd,tdw->tqw', qry_b, p_b,
                    preferred_element_type=jnp.float32)         # (TB, q_pad, way_pad)
    dist = 2.0 * qp - p_sq

    # Mask padded class columns so they contribute exp(.) = 0 to the normalizer.
    col = jax.lax.broadcasted_iota(jnp.int32, dist.shape, 2)
    dist = jnp.where(col < way, dist, -1e30)

    # ---- 5. log_softmax over the class (lane) axis ----
    m = jnp.max(dist, axis=2, keepdims=True)
    z = dist - m
    lse = jnp.log(jnp.sum(jnp.exp(z), axis=2, keepdims=True))
    out_ref[...] = z - lse


def pn_forward(support_imgs, query_imgs, w, b, *, way, shot, query,
               tasks_per_block=None):
    """Batched PN.forward over T independent few-shot tasks.
       support_imgs: (T, shot*way, C, H, W); query_imgs: (T, way*query, C, H, W).
       Returns (y_pred: (T, way*query, way), label: (way*query,))."""
    t_tasks = support_imgs.shape[0]
    n_support = shot * way
    q_total = way * query

    if tasks_per_block is None:
        tasks_per_block = next(d for d in (4, 2, 8, 1) if t_tasks % d == 0)
    assert t_tasks % tasks_per_block == 0
    tb = tasks_per_block

    sup_flat = support_imgs.reshape(t_tasks, n_support, -1).astype(jnp.bfloat16)
    qry_flat = query_imgs.reshape(t_tasks, q_total, -1).astype(jnp.bfloat16)
    k_dim = sup_flat.shape[-1]
    d_dim = w.shape[1]

    k_pad = _round_up(k_dim, 128)
    d_pad = _round_up(d_dim, 128)
    n_sup_pad = _round_up(n_support, ROW_ALIGN)
    q_pad = _round_up(q_total, ROW_ALIGN)
    way_pad = _round_up(way, 128)                   # lane-dense output width

    # Pad directly in bf16 (one pad pass; no f32 staging or concatenate).
    sup_p = jnp.pad(sup_flat, ((0, 0), (0, n_sup_pad - n_support), (0, k_pad - k_dim)))
    qry_p = jnp.pad(qry_flat, ((0, 0), (0, q_pad - q_total), (0, k_pad - k_dim)))
    w_p = jnp.pad(w.astype(jnp.bfloat16), ((0, k_pad - k_dim), (0, d_pad - d_dim)))
    b_p = jnp.pad(b.astype(jnp.float32).reshape(1, -1), ((0, 0), (0, d_pad - d_dim)))
    avg_t = _avg_matrix_t(way, shot, n_sup_pad, way_pad)   # cached constant

    flops = (2 * t_tasks * (n_sup_pad + q_pad) * k_pad * d_pad   # embedding
             + 2 * t_tasks * n_sup_pad * d_pad * way_pad         # prototypes
             + 2 * t_tasks * q_pad * d_pad * way_pad)            # query . proto
    bytes_accessed = (sup_p.size * 2 + qry_p.size * 2
                      + (t_tasks // tb) * (w_p.size * 2 + b_p.size * 4 + avg_t.size * 2)
                      + t_tasks * q_pad * way_pad * 4)
    cost = pl.CostEstimate(flops=flops,
                           transcendentals=t_tasks * q_pad * (way_pad + 1),
                           bytes_accessed=bytes_accessed)

    out = pl.pallas_call(
        functools.partial(pn_kernel, way=way, inv_shot=1.0 / shot),
        out_shape=jax.ShapeDtypeStruct((t_tasks, q_pad, way_pad), jnp.float32),
        grid=(t_tasks // tb,),
        in_specs=[
            pl.BlockSpec((tb, n_sup_pad, k_pad), lambda i: (i, 0, 0)),
            pl.BlockSpec((tb, q_pad, k_pad), lambda i: (i, 0, 0)),
            pl.BlockSpec((k_pad, d_pad), lambda i: (0, 0)),
            pl.BlockSpec((1, d_pad), lambda i: (0, 0)),
            pl.BlockSpec((n_sup_pad, way_pad), lambda i: (0, 0)),
        ],
        out_specs=pl.BlockSpec((tb, q_pad, way_pad), lambda i: (i, 0, 0)),
        compiler_params=pltpu.CompilerParams(
            dimension_semantics=("parallel",)),
        cost_estimate=cost,
    )(sup_p, qry_p, w_p, b_p, avg_t)

    y_pred = out[:, :q_total, :way]                 # slice off padding
    # create_nshot_task_label(way, query): each class id repeated `query` times.
    label = jnp.repeat(jnp.arange(way, dtype=jnp.int32), query)
    return y_pred, label


def pn_reference(support_imgs, query_imgs, w, b, *, way, shot, query):
    """Pure-JAX reference for the PyTorch semantics (batched over tasks), mirroring
    the kernel's precision policy (bf16 MXU operands, f32 accumulation/elementwise)."""
    t_tasks = support_imgs.shape[0]
    x = jnp.concatenate([support_imgs.reshape(t_tasks, shot * way, -1),
                         query_imgs.reshape(t_tasks, way * query, -1)], axis=1)
    emb = jnp.einsum('tnk,kd->tnd', x.astype(jnp.bfloat16), w.astype(jnp.bfloat16),
                     preferred_element_type=jnp.float32)
    emb = jnp.maximum(emb + b.astype(jnp.float32), 0.0)
    emb_q = emb.astype(jnp.bfloat16).astype(jnp.float32)     # MXU-operand quantization
    support = emb_q[:, :shot * way]
    queries = emb_q[:, shot * way:]
    protos = support.reshape(t_tasks, shot, way, -1).mean(axis=1)
    protos_q = protos.astype(jnp.bfloat16).astype(jnp.float32)
    diff = queries[:, :, None, :] - protos_q[:, None, :, :]
    dist = -jnp.sum(diff * diff, axis=-1)
    return jax.nn.log_softmax(dist, axis=-1)


if __name__ == "__main__":
    # T=8 small few-shot episodes: way=4 classes, shot=2, query=3 each.
    T, WAY, SHOT, QUERY = 8, 4, 2, 3
    C, H, W_IMG = 3, 8, 8
    D = 128                           # embedding dim (lane-aligned)
    K = C * H * W_IMG                 # flattened image dim (192 -> padded to 256)

    key = jax.random.PRNGKey(0)
    k1, k2, k3, k4 = jax.random.split(key, 4)

    support_imgs = jax.random.normal(k1, (T, SHOT * WAY, C, H, W_IMG), jnp.float32)
    query_imgs = jax.random.normal(k2, (T, QUERY * WAY, C, H, W_IMG), jnp.float32)

    # Deterministic synthetic baseModel parameters.
    w = jax.random.normal(k3, (K, D), jnp.float32) * 0.05
    b = jax.random.normal(k4, (1, D), jnp.float32) * 0.01

    y_pred, label = pn_forward(support_imgs, query_imgs, w, b,
                               way=WAY, shot=SHOT, query=QUERY)
    y_pred = jax.block_until_ready(y_pred)
    label = jax.block_until_ready(label)

    y_ref = pn_reference(support_imgs, query_imgs, w, b,
                         way=WAY, shot=SHOT, query=QUERY)

    assert y_pred.shape == (T, WAY * QUERY, WAY)
    assert label.shape == (WAY * QUERY,)
    # Tolerance budget: both kernel and reference use bf16 MXU operands with f32
    # accumulation; residual differences come only from f32 accumulation order and
    # the dropped (class-constant) ||q||^2 term's rounding inside log_softmax.
    assert jnp.allclose(y_pred, y_ref, rtol=0.0, atol=3e-2), \
        float(jnp.max(jnp.abs(y_pred - y_ref)))

    print("KERNEL_OK")
</pallas_src>

<mosaic_0001>
module attributes {stable_mosaic.version = 11 : i64} {
  func.func @pn_kernel(%arg0: i32, %arg1: memref<4x16x256xbf16, #tpu.memory_space<vmem>>, %arg2: memref<4x16x256xbf16, #tpu.memory_space<vmem>>, %arg3: memref<256x128xbf16, #tpu.memory_space<vmem>>, %arg4: memref<1x128xf32, #tpu.memory_space<vmem>>, %arg5: memref<16x128xbf16, #tpu.memory_space<vmem>>, %arg6: memref<4x16x128xf32, #tpu.memory_space<vmem>>) attributes {dimension_semantics = [#tpu.dimension_semantics<parallel>], iteration_bounds = array<i64: 2>, scalar_prefetch = 0 : i64, scratch_operands = 0 : i64, tpu.core_type = #tpu.core_type<tc>, window_params = [{transform_indices = @transform_0, window_bounds = array<i64: 4, 16, 256>}, {transform_indices = @transform_1, window_bounds = array<i64: 4, 16, 256>}, {pipeline_mode = #tpu.pipeline_mode<synchronous>, transform_indices = @transform_2, window_bounds = array<i64: 256, 128>}, {pipeline_mode = #tpu.pipeline_mode<synchronous>, transform_indices = @transform_3, window_bounds = array<i64: 1, 128>}, {pipeline_mode = #tpu.pipeline_mode<synchronous>, transform_indices = @transform_4, window_bounds = array<i64: 16, 128>}, {transform_indices = @transform_5, window_bounds = array<i64: 4, 16, 128>}]} {
    %c0 = arith.constant 0 : index
    %c0_0 = arith.constant 0 : index
    %0 = vector.load %arg3[%c0, %c0_0] : memref<256x128xbf16, #tpu.memory_space<vmem>>, vector<256x128xbf16>
    %c0_1 = arith.constant 0 : index
    %c0_2 = arith.constant 0 : index
    %1 = vector.load %arg4[%c0_1, %c0_2] : memref<1x128xf32, #tpu.memory_space<vmem>>, vector<1x128xf32>
    %c0_3 = arith.constant 0 : index
    %c0_4 = arith.constant 0 : index
    %c0_5 = arith.constant 0 : index
    %2 = vector.load %arg1[%c0_3, %c0_4, %c0_5] : memref<4x16x256xbf16, #tpu.memory_space<vmem>>, vector<4x16x256xbf16>
    %3 = vector.shape_cast %2 : vector<4x16x256xbf16> to vector<64x256xbf16>
    %cst = arith.constant dense<0.000000e+00> : vector<64x128xf32>
    %4 = tpu.matmul %3, %0, %cst {dimension_numbers = #tpu.dot_dimension_numbers<[1], [0], [0], [1], [0, 0, 1, 1], [], []>} : vector<64x256xbf16>, vector<256x128xbf16>, vector<64x128xf32> -> vector<64x128xf32>
    %5 = vector.broadcast %1 : vector<1x128xf32> to vector<64x128xf32>
    %6 = arith.addf %4, %5 : vector<64x128xf32>
    %cst_6 = arith.constant 0.000000e+00 : f32
    %7 = vector.broadcast %cst_6 : f32 to vector<64x128xf32>
    %8 = arith.maximumf %6, %7 : vector<64x128xf32>
    %9 = arith.truncf %8 : vector<64x128xf32> to vector<64x128xbf16>
    %10 = vector.shape_cast %9 : vector<64x128xbf16> to vector<4x16x128xbf16>
    %c0_7 = arith.constant 0 : index
    %c0_8 = arith.constant 0 : index
    %c0_9 = arith.constant 0 : index
    %11 = vector.load %arg2[%c0_7, %c0_8, %c0_9] : memref<4x16x256xbf16, #tpu.memory_space<vmem>>, vector<4x16x256xbf16>
    %12 = vector.shape_cast %11 : vector<4x16x256xbf16> to vector<64x256xbf16>
    %cst_10 = arith.constant dense<0.000000e+00> : vector<64x128xf32>
    %13 = tpu.matmul %12, %0, %cst_10 {dimension_numbers = #tpu.dot_dimension_numbers<[1], [0], [0], [1], [0, 0, 1, 1], [], []>} : vector<64x256xbf16>, vector<256x128xbf16>, vector<64x128xf32> -> vector<64x128xf32>
    %14 = vector.broadcast %1 : vector<1x128xf32> to vector<64x128xf32>
    %15 = arith.addf %13, %14 : vector<64x128xf32>
    %cst_11 = arith.constant 0.000000e+00 : f32
    %16 = vector.broadcast %cst_11 : f32 to vector<64x128xf32>
    %17 = arith.maximumf %15, %16 : vector<64x128xf32>
    %18 = arith.truncf %17 : vector<64x128xf32> to vector<64x128xbf16>
    %19 = vector.shape_cast %18 : vector<64x128xbf16> to vector<4x16x128xbf16>
    %c0_12 = arith.constant 0 : index
    %c0_13 = arith.constant 0 : index
    %20 = vector.load %arg5[%c0_12, %c0_13] : memref<16x128xbf16, #tpu.memory_space<vmem>>, vector<16x128xbf16>
    %21 = vector.shape_cast %20 : vector<16x128xbf16> to vector<1x16x128xbf16>
    %22 = vector.broadcast %21 : vector<1x16x128xbf16> to vector<4x16x128xbf16>
    "tpu.trace_start"() <{level = 10 : i32, message = "tnd,tnw->tdw"}> : () -> ()
    %cst_14 = arith.constant dense<0.000000e+00> : vector<4x128x128xf32>
    %23 = tpu.matmul %10, %22, %cst_14 {dimension_numbers = #tpu.dot_dimension_numbers<[1], [1], [2], [2], [0, 0, 0, 2, 1, 2], [0], [0]>} : vector<4x16x128xbf16>, vector<4x16x128xbf16>, vector<4x128x128xf32> -> vector<4x128x128xf32>
    "tpu.trace_stop"() : () -> ()
    %cst_15 = arith.constant 5.000000e-01 : f32
    %24 = vector.broadcast %cst_15 : f32 to vector<4x128x128xf32>
    %25 = arith.mulf %23, %24 : vector<4x128x128xf32>
    %26 = arith.truncf %25 : vector<4x128x128xf32> to vector<4x128x128xbf16>
    %27 = arith.extf %26 : vector<4x128x128xbf16> to vector<4x128x128xf32>
    %28 = arith.mulf %27, %27 : vector<4x128x128xf32>
    %cst_16 = arith.constant dense<0.000000e+00> : vector<4x128xf32>
    %29 = vector.multi_reduction <add>, %28, %cst_16 [1] : vector<4x128x128xf32> to vector<4x128xf32>
    %30 = vector.shape_cast %29 : vector<4x128xf32> to vector<4x1x128xf32>
    "tpu.trace_start"() <{level = 10 : i32, message = "tqd,tdw->tqw"}> : () -> ()
    %cst_17 = arith.constant dense<0.000000e+00> : vector<4x16x128xf32>
    %31 = tpu.matmul %19, %26, %cst_17 {dimension_numbers = #tpu.dot_dimension_numbers<[2], [1], [1], [2], [0, 0, 0, 1, 1, 2], [0], [0]>} : vector<4x16x128xbf16>, vector<4x128x128xbf16>, vector<4x16x128xf32> -> vector<4x16x128xf32>
    "tpu.trace_stop"() : () -> ()
    %cst_18 = arith.constant 2.000000e+00 : f32
    %32 = vector.broadcast %cst_18 : f32 to vector<4x16x128xf32>
    %33 = arith.mulf %32, %31 : vector<4x16x128xf32>
    %34 = vector.broadcast %30 : vector<4x1x128xf32> to vector<4x16x128xf32>
    %35 = arith.subf %33, %34 : vector<4x16x128xf32>
    %36 = tpu.iota {dimensions = array<i32: 2>} : vector<4x16x128xi32>
    %c4_i32 = arith.constant 4 : i32
    %37 = vector.broadcast %c4_i32 : i32 to vector<4x16x128xi32>
    %38 = arith.cmpi slt, %36, %37 : vector<4x16x128xi32>
    %cst_19 = arith.constant -1.000000e+30 : f32
    %39 = vector.broadcast %cst_19 : f32 to vector<4x16x128xf32>
    %40 = arith.select %38, %35, %39 : vector<4x16x128xi1>, vector<4x16x128xf32>
    %cst_20 = arith.constant dense<0xFF800000> : vector<4x16xf32>
    %41 = vector.multi_reduction <maximumf>, %40, %cst_20 [2] : vector<4x16x128xf32> to vector<4x16xf32>
    %42 = vector.shape_cast %41 : vector<4x16xf32> to vector<4x16x1xf32>
    %43 = vector.broadcast %42 : vector<4x16x1xf32> to vector<4x16x128xf32>
    %44 = arith.subf %40, %43 : vector<4x16x128xf32>
    %45 = math.exp %44 : vector<4x16x128xf32>
    %cst_21 = arith.constant dense<0.000000e+00> : vector<4x16xf32>
    %46 = vector.multi_reduction <add>, %45, %cst_21 [2] : vector<4x16x128xf32> to vector<4x16xf32>
    %47 = vector.shape_cast %46 : vector<4x16xf32> to vector<4x16x1xf32>
    %48 = math.log %47 : vector<4x16x1xf32>
    %49 = vector.broadcast %48 : vector<4x16x1xf32> to vector<4x16x128xf32>
    %50 = arith.subf %44, %49 : vector<4x16x128xf32>
    %c0_22 = arith.constant 0 : index
    %c0_23 = arith.constant 0 : index
    %c0_24 = arith.constant 0 : index
    %51 = vector.load %arg6[%c0_22, %c0_23, %c0_24] : memref<4x16x128xf32, #tpu.memory_space<vmem>>, vector<4x16x128xf32>
    tpu.vector_store %arg6[%c0_22, %c0_23, %c0_24], %50 {strides = array<i32>} : memref<4x16x128xf32, #tpu.memory_space<vmem>>, vector<4x16x128xf32>,
    return
  }
  func.func @transform_0(%arg0: i32) -> (i32, i32, i32) {
    %c0_i32 = arith.constant 0 : i32
    %c0_i32_0 = arith.constant 0 : i32
    %c0_i32_1 = arith.constant 0 : i32
    return %arg0, %c0_i32, %c0_i32_0 : i32, i32, i32
  }
  func.func @transform_1(%arg0: i32) -> (i32, i32, i32) {
    %c0_i32 = arith.constant 0 : i32
    %c0_i32_0 = arith.constant 0 : i32
    %c0_i32_1 = arith.constant 0 : i32
    return %arg0, %c0_i32, %c0_i32_0 : i32, i32, i32
  }
  func.func @transform_2(%arg0: i32) -> (i32, i32) {
    %c0_i32 = arith.constant 0 : i32
    %c0_i32_0 = arith.constant 0 : i32
    %c0_i32_1 = arith.constant 0 : i32
    return %c0_i32, %c0_i32_0 : i32, i32
  }
  func.func @transform_3(%arg0: i32) -> (i32, i32) {
    %c0_i32 = arith.constant 0 : i32
    %c0_i32_0 = arith.constant 0 : i32
    %c0_i32_1 = arith.constant 0 : i32
    return %c0_i32, %c0_i32_0 : i32, i32
  }
  func.func @transform_4(%arg0: i32) -> (i32, i32) {
    %c0_i32 = arith.constant 0 : i32
    %c0_i32_0 = arith.constant 0 : i32
    %c0_i32_1 = arith.constant 0 : i32
    return %c0_i32, %c0_i32_0 : i32, i32
  }
  func.func @transform_5(%arg0: i32) -> (i32, i32, i32) {
    %c0_i32 = arith.constant 0 : i32
    %c0_i32_0 = arith.constant 0 : i32
    %c0_i32_1 = arith.constant 0 : i32
    return %arg0, %c0_i32, %c0_i32_0 : i32, i32, i32
  }
}

</mosaic_0001>

<bundles_post_ra>
// kernel: tpu_custom_call.1
= control target key start
LH: loop header
LB: loop body
LE: loop exit
PB: predicated region body
PF: predicated region fallthrough
CT: control target
= control target key end

     0   :  { %s3044_s0 = inlined_call_operand.hbm [shape: bf16[8,16,256], index: 0, kind: input, shape index: {}]   ;;  %s3045_s1 = inlined_call_operand.hbm [shape: bf16[8,16,256], index: 1, kind: input, shape index: {}]   ;;  %s3046_s2 = inlined_call_operand.hbm [shape: bf16[256,128], index: 2, kind: input, shape index: {}]   ;;  %s3047_s3 = inlined_call_operand.vmem [shape: f32[1,128], index: 3, kind: input, shape index: {}]   ;;  %s3048_s4 = inlined_call_operand.hbm [shape: bf16[16,128], index: 4, kind: input, shape index: {}]   ;;  %s3049_s5 = inlined_call_operand.hbm [shape: f32[8,16,128], index: 5, kind: output, shape index: {}]  }
   0x1   :  { %3051 = sst [smem:[#allocation17_spill]] %s3044_s0 }
   0x2   :  { %3052 = sst [smem:[#allocation18_spill]] %s3046_s2 }
   0x3   :  { %3053 = sst [smem:[#allocation19_spill]] %s3048_s4 }
   0x4   :  { %10 = vsyncpa [#allocation3], 0 }
   0x5   :  { %12 = vsyncpa [#allocation3 + $0x1], 0 }
   0x6   :  { %13 = vsyncpa [#allocation6], 0 }
   0x7   :  { %15 = vsyncpa [#allocation6 + $0x1], 0 }
   0x8   :  { %16 = vsyncpa [#allocation9], 0 }
   0x9   :  { %17 = vsyncpa [#allocation4], 0 }
   0xa   :  { %19 = vsyncpa [#allocation4 + $0x1], 0  ;;  %s2563_s18 = smov 0   ;;  %s2565_s19 = smov 0  }
   0xb   :  { %s2567_s20 = smov 0   ;;  %s2569_s21 = smov 0  }
   0xc LB: > { %s2584_s22 = sadd.s32 4294967295, %s2523_s21   ;;  %s1950_s23 = sadd.s32 4294967294, %s2523_s21   ;;  %s2523_s21 = sphi %s2569_s21, %s3069_s21   ;;  %s2519_s20 = sphi %s2567_s20, %s3068_s20   ;;  %s2515_s19 = sphi %s2565_s19, %s3067_s19   ;;  %s2511_s18 = sphi %s2563_s18, %s3066_s18  }
   0xd   : > { %p45_p0 = scmp.ne.s32.totalorder %s2515_s19, %s2511_s18  ;;  %p46_p1 = scmp.eq.s32.totalorder %s2584_s22, 0 }
   0xe   : > { %p158_p2 = scmp.eq.s32.totalorder %s2584_s22, 1  ;;  %p164_p3 = scmp.eq.s32.totalorder %s1950_s23, 1 }
   0xf   : > { %p2593_p4 = por %p46_p1, %p45_p0  ;;  %p1951_p5 = scmp.ge.s32.totalorder %s2523_s21, 1 }
  0x10   : > { %p2598_p6 = por %p164_p3, %p45_p0  ;;  %p171_p7 = scmp.lt.s32.totalorder %s2523_s21, 3 }
  0x11   : > { %s3056_s2 = sld [smem:[#allocation18_spill]]  ;;  %s2525_s30 = smov [#allocation7]  }
  0x12   : > { %p2606_p8 = pnand %p1951_p5, %p171_p7  ;;  %s184_s6 = sshll.u32 %s2525_s30, 4  ;;  %s185_s6 = int_to_ptr.vmem [resolvable:$true] %s184_s6 }
  0x13   : > { %s3058_s4 = sld [smem:[#allocation19_spill]]  ;;  %s2526_s10 = smov 64  }
  0x14   : > { %p2192_p9 = pneg %p2606_p8  ;;  %s2527_s11 = smov 4  }
  0x15   : > { %s2528_s12 = smov [#allocation8]   ;;  %s2619_s14 = sadd.s32 1, %s2523_s21  }
  0x16   : > { %p2193_p10 = pnand %p2192_p9, %p46_p1  ;;  %s201_s13 = sshll.u32 %s2528_s12, 4  ;;  %s202_s13 = int_to_ptr.vmem [resolvable:$true] %s201_s13 }
  0x17   : > { %s182_s28 = sshll.u32 %s3056_s2, 4  ;;  %s32_s15 = sadd.s32 1, %s2519_s20  ;;  %s183_s28 = int_to_ptr.hbm [resolvable:$true] %s182_s28 }
  0x18   : > { %2195 = dma.hbm_to_vmem [thread:$0]  (!%p2193_p10), %s183_s28, 2048, %s185_s6, [#allocation6], %s2526_s10, %s2526_s10, %s2527_s11  }
  0x19   : > { %s199_s9 = sshll.u32 %s3058_s4, 4  ;;  %s29_s16 = ssub.s32 %s2523_s21, %s2619_s14  ;;  %s200_s9 = int_to_ptr.hbm [resolvable:$true] %s199_s9 }
  0x1a   : > { %2198 = dma.hbm_to_vmem [thread:$0]  (!%p2193_p10), %s200_s9, 128, %s202_s13, [#allocation9], %s2526_s10, %s2526_s10, %s2527_s11  }
  0x1b   : > { %p39_p12 = scmp.ne.s32.totalorder %s2519_s20, %s2515_s19  ;;  %p30_p13 = scmp.eq.s32.totalorder %s29_s16, 0 }
  0x1c   : > { %p40_p0 = scmp.eq.s32.totalorder %s2523_s21, 0  ;;  %p2212_p5 = scmp.lt.s32.totalorder %s2523_s21, 2 }
  0x1d   : > { %p2629_p3 = por %p158_p2, %p39_p12  ;;  %s215_s26 = sand.u32 1, %s2519_s20  }
  0x1e   : > { %s2635_s23 = scalar_select %p30_p13, %s2519_s20, %s32_s15  }
  0x1f   : > { %p41_p7 = por %p40_p0, %p39_p12  ;;  %s2638_s27 = sshll.u32 %s215_s26, 6 }
  0x20   : > { %3060 = sst [smem:[#allocation16_spill]] %s2635_s23  ;;  %s3050_s28 = sshll.u32 %s2523_s21, 6 }
  0x21   : > { %s3061_s0 = sld [smem:[#allocation17_spill]]  ;;  %s219_s8 = scalar_lea.vmem [#allocation2], %s2638_s27 }
  0x22   : > { %s228_s9 = sshll.u32 %s219_s8, 4  ;;  %p2647_p2 = pnand %p2212_p5, %p41_p7  ;;  %s229_s9 = int_to_ptr.vmem [resolvable:$true] %s228_s9 }
  0x23   : > { %s216_s12 = scalar_lea.sflag [#allocation3], %s215_s26 }
  0x24   : > { %p2389_p10 = pneg %p2647_p2 }
  0x27   : > { %s225_s7 = scalar_lea.hbm %s3061_s0, %s3050_s28  ;;  %s2392_s6 = scalar_lea.hbm %s3061_s0, 128 }
  0x28   : > { %s226_s10 = sshll.u32 %s225_s7, 4  ;;  %s227_s10 = int_to_ptr.hbm [resolvable:$true] %s226_s10 }
  0x29   : > { %s2385_s13 = sshra.s32 %s227_s10, 4  ;;  %s2386_s13 = int_to_ptr.hbm [resolvable:$true] %s2385_s13 }
  0x2a   : > { %s2387_s15 = scalar_lea.hbm %s2386_s13, 64  ;;  %p2393_p0 = scmp.lt.s32.totalorder %s2386_s13, %s3061_s0 }
  0x2b   : > { %p2388_p9 = scmp.ne.s32.totalorder %s2386_s13, %s2387_s15  ;;  %p2394_p5 = scmp.lt.s32.totalorder %s2392_s6, %s2387_s15 }
  0x2d   : > { %p2390_p12 = pnand %p2389_p10, %p2388_p9  ;;  %p2395_p7 = por %p2394_p5, %p2393_p0 }
  0x2f   : > { %p2391_p13 = pneg %p2390_p12 }
  0x31   : > { %p2396_p11 = pnand %p2395_p7, %p2391_p13 }
  0x33   : > { %2399 = shalt.err (!%p2396_p11)
}
  0x34   : > { %s2529_s26 = smov 128   ;;  %s2530_s28 = smov 8  }
  0x35   : > { %2202 = dma.hbm_to_vmem [thread:$0]  (!%p2647_p2), %s227_s10, 1024, %s229_s9, %s216_s12, %s2529_s26, %s2529_s26, %s2530_s28  }
  0x36   : > { %s3063_s2 = sshll.u32 %s2523_s21, 6  ;;  %s242_s7 = scalar_lea.vmem [#allocation5], %s2638_s27 }
  0x37   : > { %s248_s4 = scalar_lea.hbm %s3045_s1, %s3063_s2  ;;  %s251_s13 = sshll.u32 %s242_s7, 4  ;;  %s252_s13 = int_to_ptr.vmem [resolvable:$true] %s251_s13 }
  0x38   : > { %s249_s15 = sshll.u32 %s248_s4, 4  ;;  %s238_s6 = sand.u32 1, %s2523_s21   ;;  %s250_s15 = int_to_ptr.hbm [resolvable:$true] %s249_s15 }
  0x39   : > { %s239_s8 = scalar_lea.sflag [#allocation6], %s238_s6  ;;  %s2415_s0 = sshra.s32 %s250_s15, 4  ;;  %s2416_s0 = int_to_ptr.hbm [resolvable:$true] %s2415_s0 }
  0x3a   : > { %s2417_s23 = scalar_lea.hbm %s2416_s0, 64  ;;  %s2422_s12 = scalar_lea.hbm %s3045_s1, 128 }
  0x3b   : > { %p2418_p11 = scmp.ne.s32.totalorder %s2416_s0, %s2417_s23  ;;  %p2423_p13 = scmp.lt.s32.totalorder %s2416_s0, %s3045_s1 }
  0x3c   : > { %p2424_p0 = scmp.lt.s32.totalorder %s2422_s12, %s2417_s23 }
  0x3d   : > { %p2420_p9 = pnand %p2418_p11, %p2389_p10 }
  0x3e   : > { %p2425_p5 = por %p2424_p0, %p2423_p13 }
  0x3f   : > { %p2421_p12 = pneg %p2420_p9 }
  0x41   : > { %p2426_p7 = pnand %p2425_p5, %p2421_p12 }
  0x43   : > { %2429 = shalt.err (!%p2426_p7)
}
  0x44   : > { %2205 = dma.hbm_to_vmem [thread:$0]  (!%p2647_p2), %s250_s15, 1024, %s252_s13, %s239_s8, %s2529_s26, %s2529_s26, %s2530_s28  }
  0x45   : > { %263 = sbr.rel (%p2606_p8) target bundleno = 1317 (0x525), region = 40  ;;  %s2685_s4 = sand.u32 (!%p2606_p8), 1, %s2515_s19  }
  0x46   : > { %s2688_s16 = sshll.u32 (!%p2606_p8), %s2685_s4, 6  ;;  %s266_s0 = scalar_lea.sflag (!%p2606_p8), [#allocation3], %s2685_s4 }
  0x47   : > { %s2692_s23 = scalar_lea.vmem (!%p2606_p8), [#allocation2], %s2688_s16 }
  0x4a   : > { %2490 = dma.done.wait (%p2593_p4), %s266_s0, 1024  }
  0x4b   : > { %2492 = vsyncadd (%p2593_p4), %s266_s0, 4294966272  ;;  %s275_s29 = sand.u32 1, %s2584_s22   ;;  %s2700_s11 = scalar_lea.vmem [#allocation5], %s2688_s16 }
  0x4c   : > { %s276_s28 = scalar_lea.sflag [#allocation6], %s275_s29 }
  0x4d   : > { %2494 = dma.done.wait (%p2593_p4), %s276_s28, 1024  }
  0x4e   : > { %2496 = vsyncadd (%p2593_p4), %s276_s28, 4294966272 }
  0x4f   : > { %2498 = dma.done.wait (%p46_p1), [#allocation6], 2048  }
  0x50   : > { %2500 = vsyncadd (%p46_p1), [#allocation6], 4294965248 }
  0x51   : > { %2502 = dma.done.wait (%p46_p1), [#allocation9], 128  }
  0x52   : > { %2504 = vsyncadd (%p46_p1), [#allocation9], 4294967168  ;;  %v2150_v0 = vld [vmem:[#allocation7 + $0x38] sm:$0xff]  ;;  %v2149_v2 = vld [vmem:[#allocation7 + $0x30] sm:$0xff]  ;;  %vm732_vm0 = vcmask 130048   ;;  %s2993_s13 = scalar_lea.vmem [#allocation10], %s2688_s16 }
  0x53   : > { %v2158_v1 = vld [vmem:[#allocation7 + $0x78] sm:$0xff]  ;;  %506 = vmatpush.bf16.msra.mxu0 %v2150_v0  ;;  %v2157_v3 = vld [vmem:[#allocation7 + $0x70] sm:$0xff]  ;;  %628 = vmatpush.bf16.msra.mxu2 %v2150_v0  ;;  %v2148_v4 = vld [vmem:[#allocation7 + $0x28] sm:$0xff]  ;;  %s2177_s15 = sshll.u32 %s2584_s22, 6  ;;  %s1832_s10 = sshll.u32 %s2993_s13, 4  ;;  %s1833_s10 = int_to_ptr.vmem [resolvable:$true] %s1832_s10 }
  0x54   : > { %535 = vmatpush.bf16.msra.mxu1 %v2158_v1  ;;  %657 = vmatpush.bf16.msra.mxu3 %v2158_v1  ;;  %v2156_v5 = vld [vmem:[#allocation7 + $0x68] sm:$0xff]  ;;  %v2147_v6 = vld [vmem:[#allocation7 + $0x20] sm:$0xff]  ;;  %v2146_v8 = vld [vmem:[#allocation7 + $0x18] sm:$0xff]  ;;  %s1831_s9 = scalar_lea.hbm %s3049_s5, %s2177_s15  ;;  %s1819_s22 = scalar_lea.sflag [#allocation4], %s2685_s4 }
  0x55   : > { %v2155_v7 = vld [vmem:[#allocation7 + $0x60] sm:$0xff]  ;;  %v2154_v9 = vld [vmem:[#allocation7 + $0x58] sm:$0xff]  ;;  %v2145_v10 = vld [vmem:[#allocation7 + $0x10] sm:$0xff]  ;;  %s1834_s12 = sshll.u32 %s1831_s9, 4  ;;  %s1835_s12 = int_to_ptr.hbm [resolvable:$true] %s1834_s12 }
  0x56   : > { %v2153_v11 = vld [vmem:[#allocation7 + $0x50] sm:$0xff]  ;;  %v2144_v12 = vld [vmem:[#allocation7 + $0x8] sm:$0xff]  ;;  %v2143_v14 = vld [vmem:[#allocation7] sm:$0xff]  ;;  %s2459_s2 = sshra.s32 %s1835_s12, 4  ;;  %s2460_s2 = int_to_ptr.hbm [resolvable:$true] %s2459_s2 }
  0x57   : > { %507 = vmatpush.bf16.msra.mxu0 %v2149_v2  ;;  %629 = vmatpush.bf16.msra.mxu2 %v2149_v2  ;;  %v2152_v13 = vld [vmem:[#allocation7 + $0x48] sm:$0xff]  ;;  %v2151_v15 = vld [vmem:[#allocation7 + $0x40] sm:$0xff]  ;;  %v1979_v22 = vld [vmem:[%s2692_s23 + $0x10] sm:$0xf]  ;;  %s2461_s27 = scalar_lea.hbm %s2460_s2, 64  ;;  %p2466_p2 = scmp.lt.s32.totalorder %s2460_s2, %s3049_s5 }
  0x58   : > { %536 = vmatpush.bf16.msra.mxu1 %v2157_v3  ;;  %658 = vmatpush.bf16.msra.mxu3 %v2157_v3  ;;  %v1971_v16 = vld [vmem:[%s2692_s23] sm:$0xf]  ;;  %v2160_v17 = vld [vmem:[%s2692_s23 + $0x4] sm:$0xf0]  ;;  %v2159_v18 = vld [vmem:[%s2692_s23 + $0x4] sm:$0xf]  ;;  %p2462_p1 = scmp.ne.s32.totalorder %s2460_s2, %s2461_s27 }
  0x59   : > { %v1973_v19 = vld [vmem:[%s2692_s23 + $0x8] sm:$0xf0]  ;;  %v1972_v20 = vor.u32 %v2160_v17, %v1971_v16  ;;  %v2162_v23 = vld [vmem:[%s2692_s23 + $0x14] sm:$0xf0]  ;;  %v2161_v24 = vld [vmem:[%s2692_s23 + $0x14] sm:$0xf] }
  0x5a   : > { %v1976_v21 = vor.u32 %v2159_v18, %v1973_v19  ;;  %v1981_v25 = vld [vmem:[%s2692_s23 + $0x18] sm:$0xf0]  ;;  %v1980_v26 = vor.u32 %v2162_v23, %v1979_v22  ;;  %v1987_v28 = vld [vmem:[%s2692_s23 + $0x20] sm:$0xf]  ;;  %v2164_v29 = vld [vmem:[%s2692_s23 + $0x24] sm:$0xf0]  ;;  %p2463_p4 = pnand %p2462_p1, %p2629_p3 }
  0x5b   : > { %508 = vmatpush.bf16.msra.mxu0 %v2148_v4  ;;  %630 = vmatpush.bf16.msra.mxu2 %v2148_v4  ;;  %v1984_v27 = vor.u32 %v2161_v24, %v1981_v25  ;;  %v2163_v30 = vld [vmem:[%s2692_s23 + $0x24] sm:$0xf]  ;;  %v1989_v31 = vld [vmem:[%s2692_s23 + $0x28] sm:$0xf0]  ;;  %v1988_v32 = vor.u32 %v2164_v29, %v1987_v28  ;;  %v1995_v34 = vld [vmem:[%s2692_s23 + $0x30] sm:$0xf] }
  0x5c   : > { %537 = vmatpush.bf16.msra.mxu1 %v2156_v5  ;;  %659 = vmatpush.bf16.msra.mxu3 %v2156_v5  ;;  %v1992_v33 = vor.u32 %v2163_v30, %v1989_v31  ;;  %v2166_v35 = vld [vmem:[%s2692_s23 + $0x34] sm:$0xf0]  ;;  %v2165_v36 = vld [vmem:[%s2692_s23 + $0x34] sm:$0xf]  ;;  %v1997_v37 = vld [vmem:[%s2692_s23 + $0x38] sm:$0xf0]  ;;  %p2464_p8 = pneg %p2463_p4 }
  0x5d   : > { %v1996_v38 = vor.u32 %v2166_v35, %v1995_v34  ;;  %v2000_v39 = vor.u32 %v2165_v36, %v1997_v37  ;;  %v2733_v40 = vld [vmem:[%s3047_s3] ss:$0 sm:$0xff]  ;;  %v2168_v1 = vld [vmem:[%s2700_s11 + $0x4] sm:$0xf0]  ;;  %v2167_v3 = vld [vmem:[%s2700_s11 + $0x4] sm:$0xf] }
  0x5e   : > { %v2067_v0 = vld [vmem:[%s2700_s11] sm:$0xf]  ;;  %v2069_v4 = vld [vmem:[%s2700_s11 + $0x8] sm:$0xf0]  ;;  %v2169_v37 = vld [vmem:[%s2700_s11 + $0x14] sm:$0xf] }
  0x5f   : > { %509 = vmatpush.bf16.msra.mxu0 %v2147_v6  ;;  %631 = vmatpush.bf16.msra.mxu2 %v2147_v6  ;;  %v2068_v2 = vor.u32 %v2168_v1, %v2067_v0  ;;  %v2072_v5 = vor.u32 %v2167_v3, %v2069_v4  ;;  %s2465_s23 = scalar_lea.hbm %s3049_s5, 128 }
  0x60   : > { %538 = vmatpush.bf16.msra.mxu1 %v2155_v7  ;;  %660 = vmatpush.bf16.msra.mxu3 %v2155_v7  ;;  %p2467_p10 = scmp.lt.s32.totalorder %s2465_s23, %s2461_s27 }
  0x62   : > { %p2468_p11 = por %p2467_p10, %p2466_p2 }
  0x63   : > { %510 = vmatpush.bf16.msra.mxu0 %v2146_v8  ;;  %632 = vmatpush.bf16.msra.mxu2 %v2146_v8 }
  0x64   : > { %539 = vmatpush.bf16.msra.mxu1 %v2154_v9  ;;  %661 = vmatpush.bf16.msra.mxu3 %v2154_v9  ;;  %p2469_p9 = pnand %p2468_p11, %p2464_p8 }
  0x67   : > { %511 = vmatpush.bf16.msra.mxu0 %v2145_v10  ;;  %633 = vmatpush.bf16.msra.mxu2 %v2145_v10 }
  0x68   : > { %540 = vmatpush.bf16.msra.mxu1 %v2153_v11  ;;  %662 = vmatpush.bf16.msra.mxu3 %v2153_v11 }
  0x6b   : > { %512 = vmatpush.bf16.msra.mxu0 %v2144_v12  ;;  %634 = vmatpush.bf16.msra.mxu2 %v2144_v12 }
  0x6c   : > { %541 = vmatpush.bf16.msra.mxu1 %v2152_v13  ;;  %663 = vmatpush.bf16.msra.mxu3 %v2152_v13  ;;  %v2075_v13 = vld [vmem:[%s2700_s11 + $0x10] sm:$0xf] }
  0x6f   : > { %513 = vmatpush.bf16.msra.mxu0 %v2143_v14  ;;  %635 = vmatpush.bf16.msra.mxu2 %v2143_v14  ;;  %v2170_v14 = vld [vmem:[%s2700_s11 + $0x14] sm:$0xf0] }
  0x70   : > { %542 = vmatpush.bf16.msra.mxu1 %v2151_v15  ;;  %664 = vmatpush.bf16.msra.mxu3 %v2151_v15  ;;  %v2076_v16 = vor.u32 %v2170_v14, %v2075_v13 }
  0x72   : > { %514 = vmatmul.bf16.vlgmr.msra.gmra.mxu0 %v1972_v20  ;;  %636 = vmatmul.bf16.vlgmr.msra.gmra.mxu2 %v2068_v2 }
  0x73   : > { %543 = vmatmul.bf16.vlgmr.msra.gmra.mxu1 %v1976_v21  ;;  %665 = vmatmul.bf16.vlgmr.msra.gmra.mxu3 %v2072_v5 }
  0x82   : > { %519 = vmatmul.bf16.gmra.mxu0 %v1980_v26  ;;  %641 = vmatmul.bf16.gmra.mxu2 %v2076_v16 }
  0x83   : > { %548 = vmatmul.bf16.gmra.mxu1 %v1984_v27 }
  0x92   : > { %524 = vmatmul.bf16.gmra.mxu0 %v1988_v32 }
  0x93   : > { %553 = vmatmul.bf16.gmra.mxu1 %v1992_v33 }
  0xa2   : > { %529 = vmatmul.bf16.gmra.mxu0 %v1996_v38  ;;  %v2077_v38 = vld [vmem:[%s2700_s11 + $0x18] sm:$0xf0] }
  0xa3   : > { %558 = vmatmul.bf16.gmra.mxu1 %v2000_v39  ;;  %v2083_v39 = vld [vmem:[%s2700_s11 + $0x20] sm:$0xf] }
  0xef   : > { %v515_v41 = vpop.f32.mrf.mxu0 }
  0xf0   : > { %v544_v42 = vpop.f32.mrf.mxu1  ;;  %v516_v43 = vadd.f32 %v2733_v40, %v515_v41  ;;  %v2080_v41 = vor.u32 %v2169_v37, %v2077_v38 }
  0xf2   : > { %v2736_v44 = vadd.f32 %v544_v42, %v516_v43  ;;  %v2172_v42 = vld [vmem:[%s2700_s11 + $0x24] sm:$0xf0]  ;;  %670 = vmatmul.bf16.gmra.mxu3 %v2080_v41 }
  0xf3   : > { %v2084_v43 = vor.u32 %v2172_v42, %v2083_v39 }
  0xf5   : > { %646 = vmatmul.bf16.gmra.mxu2 %v2084_v43  ;;  %v637_v5 = vpop.f32.mrf.mxu2 }
  0xf7   : > { %v2738_v45 = vpop.f32.mrf.mxu0 }
  0xf8   : > { %v2740_v46 = vpop.f32.mrf.mxu1 }
  0xff   : > { %v520_v47 = vpop.f32.mrf.mxu0 }
 0x100   : > { %v549_v48 = vpop.f32.mrf.mxu1  ;;  %v521_v49 = vadd.f32 %v2733_v40, %v520_v47  ;;  %v2175_v47 = vld [vmem:[#allocation8] sm:$0xff] }
 0x101   : > { %954 = vmatpush.bf16.msrb.mxu2 %v2175_v47  ;;  %1049 = vmatpush.bf16.msrb.mxu3 %v2175_v47 }
 0x102   : > { %v550_v50 = vadd.f32 %v549_v48, %v521_v49  ;;  %764 = vmatpush.bf16.msrb.mxu0 %v2175_v47  ;;  %859 = vmatpush.bf16.msrb.mxu1 %v2175_v47  ;;  %v518_v48 = vadd.f32 %v2733_v40, %v2738_v45  ;;  %v2171_v49 = vld [vmem:[%s2700_s11 + $0x24] sm:$0xf]  ;;  %v2173_v45 = vld [vmem:[%s2700_s11 + $0x34] sm:$0xf] }
 0x104   : > { %v566_v53 = vmax.f32 %v550_v50, 0.0  ;;  %v2085_v50 = vld [vmem:[%s2700_s11 + $0x28] sm:$0xf0] }
 0x106   : > { %v574_v56 = vpack.c.bf16 %v566_v53, %v566_v53  ;;  %v547_v53 = vadd.f32 %v2740_v46, %v518_v48 }
 0x107   : > { %v522_v51 = vpop.f32.mrf.mxu0 }
 0x108   : > { %v551_v52 = vpop.f32.mrf.mxu1  ;;  %v523_v54 = vadd.f32 %v2733_v40, %v522_v51  ;;  %v808_v61 = vunpack.c.l.b16 %v574_v56  ;;  %v2091_v51 = vld [vmem:[%s2700_s11 + $0x30] sm:$0xf]  ;;  %v565_v56 = vmax.f32 %v547_v53, 0.0 }
 0x10a   : > { %v552_v55 = vadd.f32 %v551_v52, %v523_v54  ;;  %v2174_v52 = vld [vmem:[%s2700_s11 + $0x34] sm:$0xf0]  ;;  %v2088_v54 = vor.u32 %v2171_v49, %v2085_v50 }
 0x10c   : > { %v567_v57 = vmax.f32 %v552_v55, 0.0  ;;  %v2092_v55 = vor.u32 %v2174_v52, %v2091_v51  ;;  %675 = vmatmul.bf16.gmra.mxu3 %v2088_v54 }
 0x10e   : > { %v575_v58 = vpack.c.bf16 %v567_v57, %v567_v57  ;;  %v564_v57 = vmax.f32 %v2736_v44, 0.0  ;;  %651 = vmatmul.bf16.gmra.mxu2 %v2092_v55 }
 0x10f   : > { %v525_v59 = vpop.f32.mrf.mxu0 }
 0x110   : > { %v554_v60 = vpop.f32.mrf.mxu1  ;;  %v809_v62 = vunpack.c.l.b16 %v575_v58  ;;  %v526_v11 = vadd.f32 %v2733_v40, %v525_v59  ;;  %v573_v58 = vpack.c.bf16 %v565_v56, %v565_v56  ;;  %v572_v59 = vpack.c.bf16 %v564_v57, %v564_v57 }
 0x112   : > { %v2744_v63 = vpack.c.b16 %v809_v62, %v808_v61  ;;  %v555_v17 = vadd.f32 %v554_v60, %v526_v11  ;;  %v707_v60 = vunpack.c.l.b16 %v573_v58  ;;  %v706_v61 = vunpack.c.l.b16 %v572_v59  ;;  %v2093_v62 = vld [vmem:[%s2700_s11 + $0x38] sm:$0xf0] }
 0x113   : > { %v2096_v1 = vor.u32 %v2173_v45, %v2093_v62 }
 0x114   : > { %v568_v21 = vmax.f32 %v555_v17, 0.0  ;;  %v708_v0 = vpack.c.b16 %v707_v60, %v706_v61 }
 0x116   : > { %v576_v27 = vpack.c.bf16 %v568_v21, %v568_v21 }
 0x117   : > { %v527_v6 = vpop.f32.mrf.mxu0 }
 0x118   : > { %v556_v7 = vpop.f32.mrf.mxu1  ;;  %v528_v8 = vadd.f32 %v2733_v40, %v527_v6  ;;  %v903_v32 = vunpack.c.l.b16 %v576_v27 }
 0x11a   : > { %v557_v15 = vadd.f32 %v556_v7, %v528_v8  ;;  %v2778_v7 = vpop.f32.mrf.mxu2  ;;  %v666_v8 = vpop.f32.mrf.mxu3 }
 0x11c   : > { %v569_v19 = vmax.f32 %v557_v15, 0.0  ;;  %680 = vmatmul.bf16.gmra.mxu3 %v2096_v1 }
 0x11e   : > { %v577_v25 = vpack.c.bf16 %v569_v19, %v569_v19 }
 0x11f   : > { %v530_v9 = vpop.f32.mrf.mxu0 }
 0x120   : > { %v559_v10 = vpop.f32.mrf.mxu1  ;;  %v531_v12 = vadd.f32 %v2733_v40, %v530_v9  ;;  %v904_v30 = vunpack.c.l.b16 %v577_v25 }
 0x122   : > { %v560_v18 = vadd.f32 %v559_v10, %v531_v12  ;;  %v905_v35 = vpack.c.b16 %v904_v30, %v903_v32  ;;  %v642_v11 = vpop.f32.mrf.mxu2  ;;  %v2783_v12 = vpop.f32.mrf.mxu3 }
 0x123   : > { %v643_v13 = vadd.f32 %v2733_v40, %v642_v11 }
 0x124   : > { %v570_v22 = vmax.f32 %v560_v18, 0.0 }
 0x126   : > { %v578_v28 = vpack.c.bf16 %v570_v22, %v570_v22 }
 0x127   : > { %v532_v20 = vpop.f32.mrf.mxu0 }
 0x128   : > { %v533_v23 = vadd.f32 %v2733_v40, %v532_v20  ;;  %v561_v24 = vpop.f32.mrf.mxu1  ;;  %v998_v33 = vunpack.c.l.b16 %v578_v28 }
 0x12a   : > { %v562_v26 = vadd.f32 %v561_v24, %v533_v23  ;;  %v644_v15 = vpop.f32.mrf.mxu2 }
 0x12b   : > { %v645_v18 = vadd.f32 %v2733_v40, %v644_v15 }
 0x12c   : > { %v571_v29 = vmax.f32 %v562_v26, 0.0 }
 0x12e   : > { %v579_v31 = vpack.c.bf16 %v571_v29, %v571_v29 }
 0x130   : > { %v999_v34 = vunpack.c.l.b16 %v579_v31 }
 0x132   : > { %v1000_v36 = vpack.c.b16 %v999_v34, %v998_v33 }
 0x134   : > { %2257 = vxpose.binary.xlu0.c.b16.start.end [1/2] (short) %v1000_v36, %v905_v35, 128 }
 0x175   : > { %v671_v16 = vpop.f32.mrf.mxu3 }
 0x176   : > { %v672_v17 = vadd.f32 %v671_v16, %v643_v13 }
 0x178   : > { %v688_v19 = vmax.f32 %v672_v17, 0.0  ;;  %v647_v21 = vpop.f32.mrf.mxu2 }
 0x179   : > { %v648_v27 = vadd.f32 %v2733_v40, %v647_v21 }
 0x17a   : > { %v696_v23 = vpack.c.bf16 %v688_v19, %v688_v19 }
 0x17c   : > { %v1501_v26 = vunpack.c.l.b16 %v696_v23 }
 0x17d   : > { %v673_v22 = vpop.f32.mrf.mxu3 }
 0x17e   : > { %v674_v24 = vadd.f32 %v673_v22, %v645_v18 }
 0x180   : > { %v689_v25 = vmax.f32 %v674_v24, 0.0  ;;  %v649_v31 = vpop.f32.mrf.mxu2 }
 0x181   : > { %v650_v35 = vadd.f32 %v2733_v40, %v649_v31 }
 0x182   : > { %v697_v28 = vpack.c.bf16 %v689_v25, %v689_v25 }
 0x184   : > { %v1502_v30 = vunpack.c.l.b16 %v697_v28 }
 0x186   : > { %v2791_v33 = vpack.c.b16 %v1502_v30, %v1501_v26 }
 0x18f   : > { %v676_v32 = vpop.f32.mrf.mxu3 }
 0x190   : > { %v677_v34 = vadd.f32 %v676_v32, %v648_v27 }
 0x191   : > { %v652_v42 = vpop.f32.mrf.mxu2 }
 0x192   : > { %v690_v36 = vmax.f32 %v677_v34, 0.0  ;;  %v653_v48 = vadd.f32 %v2733_v40, %v652_v42 }
 0x194   : > { %v698_v39 = vpack.c.bf16 %v690_v36, %v690_v36 }
 0x196   : > { %v1569_v47 = vunpack.c.l.b16 %v698_v39 }
 0x197   : > { %v678_v38 = vpop.f32.mrf.mxu3 }
 0x198   : > { %v679_v41 = vadd.f32 %v678_v38, %v650_v35 }
 0x199   : > { %v654_v55 = vpop.f32.mrf.mxu2 }
 0x19a   : > { %v691_v43 = vmax.f32 %v679_v41, 0.0  ;;  %v655_v56 = vadd.f32 %v2733_v40, %v654_v55 }
 0x19c   : > { %v699_v49 = vpack.c.bf16 %v691_v43, %v691_v43 }
 0x19e   : > { %v1570_v51 = vunpack.c.l.b16 %v699_v49 }
 0x19f   : > { %v681_v52 = vpop.f32.mrf.mxu3 }
 0x1a0   : > { %v2797_v53 = vpack.c.b16 %v1570_v51, %v1569_v47  ;;  %v682_v54 = vadd.f32 %v681_v52, %v653_v48 }
 0x1a2   : > { %v692_v57 = vmax.f32 %v682_v54, 0.0 }
 0x1a4   : > { %v700_v60 = vpack.c.bf16 %v692_v57, %v692_v57 }
 0x1a6   : > { %v1637_v62 = vunpack.c.l.b16 %v700_v60 }
 0x1a7   : > { %v683_v59 = vpop.f32.mrf.mxu3 }
 0x1a8   : > { %v684_v61 = vadd.f32 %v683_v59, %v655_v56 }
 0x1aa   : > { %v693_v45 = vmax.f32 %v684_v61, 0.0 }
 0x1b4   : > { %2274 = vxpose.binary.xlu0.c.b16.start.end [1/2] (short) %v2744_v63, %v708_v0, 128  ;;  %v638_v63 = vadd.f32 %v2733_v40, %v637_v5  ;;  %v701_v0 = vpack.c.bf16 %v693_v45, %v693_v45 }
 0x1b6   : > { %v2780_v9 = vadd.f32 %v666_v8, %v638_v63 }
 0x1e0   : > { %v2258_v46 = vpop.trf.xlu0 }
 0x1e1   : > { %2117 = vmatmul.msk.bf16.vlgmr.msrb.gmra.mxu2 %vm732_vm0, %v2258_v46  ;;  %v1638_v46 = vunpack.c.l.b16 %v701_v0 }
 0x1e8   : > { %v2259_v2 = vpop.trf.xlu0 }
 0x1e9   : > { %2125 = vmatmul.msk.bf16.vlgmr.msrb.gmra.mxu3 %vm732_vm0, %v2259_v2  ;;  %v2802_v2 = vpack.c.b16 %v1638_v46, %v1637_v62 }
 0x1f0   : > { %v2260_v44 = vpop.trf.xlu0 }
 0x1f1   : > { %2118 = vmatmul.msk.bf16.gmra.mxu2 %vm732_vm0, %v2260_v44 }
 0x1f8   : > { %v2261_v3 = vpop.trf.xlu0 }
 0x1f9   : > { %2126 = vmatmul.msk.bf16.gmra.mxu3 %vm732_vm0, %v2261_v3 }
 0x200   : > { %v2262_v4 = vpop.trf.xlu0 }
 0x201   : > { %2119 = vmatmul.msk.bf16.gmra.mxu2 %vm732_vm0, %v2262_v4 }
 0x208   : > { %v2263_v6 = vpop.trf.xlu0 }
 0x209   : > { %2127 = vmatmul.msk.bf16.gmra.mxu3 %vm732_vm0, %v2263_v6 }
 0x210   : > { %v2264_v10 = vpop.trf.xlu0 }
 0x211   : > { %2120 = vmatmul.msk.bf16.gmra.mxu2 %vm732_vm0, %v2264_v10 }
 0x218   : > { %v2265_v14 = vpop.trf.xlu0 }
 0x219   : > { %2128 = vmatmul.msk.bf16.gmra.mxu3 %vm732_vm0, %v2265_v14 }
 0x220   : > { %v2266_v20 = vpop.trf.xlu0 }
 0x221   : > { %2121 = vmatmul.msk.bf16.gmra.mxu2 %vm732_vm0, %v2266_v20 }
 0x228   : > { %v2267_v29 = vpop.trf.xlu0 }
 0x229   : > { %2129 = vmatmul.msk.bf16.gmra.mxu3 %vm732_vm0, %v2267_v29 }
 0x230   : > { %v2268_v37 = vpop.trf.xlu0 }
 0x231   : > { %2122 = vmatmul.msk.bf16.gmra.mxu2 %vm732_vm0, %v2268_v37 }
 0x238   : > { %v2269_v50 = vpop.trf.xlu0 }
 0x239   : > { %2130 = vmatmul.msk.bf16.gmra.mxu3 %vm732_vm0, %v2269_v50 }
 0x240   : > { %v2270_v58 = vpop.trf.xlu0 }
 0x241   : > { %2123 = vmatmul.msk.bf16.gmra.mxu2 %vm732_vm0, %v2270_v58 }
 0x248   : > { %v2271_v1 = vpop.trf.xlu0 }
 0x249   : > { %2131 = vmatmul.msk.bf16.gmra.mxu3 %vm732_vm0, %v2271_v1 }
 0x250   : > { %v2272_v44 = vpop.trf.xlu0 }
 0x251   : > { %2124 = vmatmul.msk.bf16.gmra.mxu2 %vm732_vm0, %v2272_v44 }
 0x258   : > { %v2273_v40 = vpop.trf.xlu0 }
 0x259   : > { %2132 = vmatmul.msk.bf16.gmra.mxu3 %vm732_vm0, %v2273_v40 }
 0x260   : > { %v2275_v3 = vpop.trf.xlu0 }
 0x261   : > { %2101 = vmatmul.msk.bf16.vlgmr.msrb.gmra.mxu0 %vm732_vm0, %v2275_v3 }
 0x264   : > { %v956_v4 = vpop.f32.mrf.mxu2 }
 0x265   : > { %v1123_v5 = vmul.f32 0.5, %v956_v4 }
 0x267   : > { %v1187_v6 = vpack.c.bf16 %v1123_v5, %v1123_v5 }
 0x268   : > { %v2276_v63 = vpop.trf.xlu0 }
 0x269   : > { %2109 = vmatmul.msk.bf16.vlgmr.msrb.gmra.mxu1 %vm732_vm0, %v2276_v63  ;;  %v1251_v13 = vunpack.c.l.bf16 %v1187_v6  ;;  %v1589_v17 = vunpack.c.l.b16 %v1187_v6 }
 0x26b   : > { %v1315_v20 = vmul.f32 %v1251_v13, %v1251_v13 }
 0x26c   : > { %v958_v8 = vpop.f32.mrf.mxu2  ;;  %v1051_v10 = vpop.f32.mrf.mxu3 }
 0x26d   : > { %v1124_v11 = vmul.f32 0.5, %v958_v8  ;;  %v1139_v15 = vmul.f32 0.5, %v1051_v10 }
 0x26f   : > { %v1188_v14 = vpack.c.bf16 %v1124_v11, %v1124_v11  ;;  %v1203_v22 = vpack.c.bf16 %v1139_v15, %v1139_v15 }
 0x270   : > { %v2277_v16 = vpop.trf.xlu0 }
 0x271   : > { %v1252_v18 = vunpack.c.l.bf16 %v1188_v14  ;;  %v1590_v19 = vunpack.c.l.b16 %v1188_v14  ;;  %2102 = vmatmul.msk.bf16.gmra.mxu0 %vm732_vm0, %v2277_v16  ;;  %v1267_v29 = vunpack.c.l.bf16 %v1203_v22  ;;  %v1657_v34 = vunpack.c.l.b16 %v1203_v22 }
 0x273   : > { %v1316_v21 = vmul.f32 %v1252_v18, %v1252_v18  ;;  %v2809_v23 = vpack.c.b16 %v1590_v19, %v1589_v17  ;;  %v1331_v38 = vmul.f32 %v1267_v29, %v1267_v29 }
 0x274   : > { %v961_v24 = vpop.f32.mrf.mxu2  ;;  %v1053_v25 = vpop.f32.mrf.mxu3 }
 0x275   : > { %v1389_v26 = vadd.f32 %v1316_v21, %v1315_v20  ;;  %v1125_v27 = vmul.f32 0.5, %v961_v24  ;;  %v1140_v28 = vmul.f32 0.5, %v1053_v25 }
 0x277   : > { %v1189_v30 = vpack.c.bf16 %v1125_v27, %v1125_v27  ;;  %v1204_v31 = vpack.c.bf16 %v1140_v28, %v1140_v28 }
 0x278   : > { %v2278_v32 = vpop.trf.xlu0 }
 0x279   : > { %v1253_v35 = vunpack.c.l.bf16 %v1189_v30  ;;  %v1268_v36 = vunpack.c.l.bf16 %v1204_v31  ;;  %v1658_v37 = vunpack.c.l.b16 %v1204_v31  ;;  %2110 = vmatmul.msk.bf16.gmra.mxu1 %vm732_vm0, %v2278_v32  ;;  %v1591_v56 = vunpack.c.l.b16 %v1189_v30 }
 0x27b   : > { %v1317_v39 = vmul.f32 %v1253_v35, %v1253_v35  ;;  %v1332_v41 = vmul.f32 %v1268_v36, %v1268_v36  ;;  %v2812_v42 = vpack.c.b16 %v1658_v37, %v1657_v34 }
 0x27c   : > { %v963_v43 = vpop.f32.mrf.mxu2  ;;  %v1056_v47 = vpop.f32.mrf.mxu3 }
 0x27d   : > { %v1390_v48 = vadd.f32 %v1389_v26, %v1317_v39  ;;  %v1410_v49 = vadd.f32 %v1332_v41, %v1331_v38  ;;  %v1126_v50 = vmul.f32 0.5, %v963_v43  ;;  %v1141_v51 = vmul.f32 0.5, %v1056_v47 }
 0x27f   : > { %v1190_v52 = vpack.c.bf16 %v1126_v50, %v1126_v50  ;;  %v1205_v54 = vpack.c.bf16 %v1141_v51, %v1141_v51 }
 0x280   : > { %v2279_v55 = vpop.trf.xlu0 }
 0x281   : > { %v1254_v57 = vunpack.c.l.bf16 %v1190_v52  ;;  %v1592_v58 = vunpack.c.l.b16 %v1190_v52  ;;  %v1269_v59 = vunpack.c.l.bf16 %v1205_v54  ;;  %2103 = vmatmul.msk.bf16.gmra.mxu0 %vm732_vm0, %v2279_v55  ;;  %v1659_v63 = vunpack.c.l.b16 %v1205_v54 }
 0x283   : > { %v1318_v60 = vmul.f32 %v1254_v57, %v1254_v57  ;;  %v1333_v61 = vmul.f32 %v1269_v59, %v1269_v59  ;;  %v2815_v45 = vpack.c.b16 %v1592_v58, %v1591_v56 }
 0x284   : > { %v966_v62 = vpop.f32.mrf.mxu2  ;;  %v1058_v0 = vpop.f32.mrf.mxu3 }
 0x285   : > { %v1391_v1 = vadd.f32 %v1390_v48, %v1318_v60  ;;  %v1411_v46 = vadd.f32 %v1410_v49, %v1333_v61  ;;  %v1127_v44 = vmul.f32 0.5, %v966_v62  ;;  %v1142_v40 = vmul.f32 0.5, %v1058_v0 }
 0x287   : > { %v1191_v3 = vpack.c.bf16 %v1127_v44, %v1127_v44  ;;  %v1206_v4 = vpack.c.bf16 %v1142_v40, %v1142_v40 }
 0x288   : > { %v2280_v5 = vpop.trf.xlu0 }
 0x289   : > { %v1255_v6 = vunpack.c.l.bf16 %v1191_v3  ;;  %v1270_v8 = vunpack.c.l.bf16 %v1206_v4  ;;  %v1660_v10 = vunpack.c.l.b16 %v1206_v4  ;;  %2111 = vmatmul.msk.bf16.gmra.mxu1 %vm732_vm0, %v2280_v5  ;;  %v1593_v25 = vunpack.c.l.b16 %v1191_v3 }
 0x28b   : > { %v1319_v11 = vmul.f32 %v1255_v6, %v1255_v6  ;;  %v1334_v13 = vmul.f32 %v1270_v8, %v1270_v8  ;;  %v2818_v14 = vpack.c.b16 %v1660_v10, %v1659_v63 }
 0x28c   : > { %v968_v15 = vpop.f32.mrf.mxu2  ;;  %v1061_v16 = vpop.f32.mrf.mxu3 }
 0x28d   : > { %v1392_v17 = vadd.f32 %v1391_v1, %v1319_v11  ;;  %v1412_v18 = vadd.f32 %v1411_v46, %v1334_v13  ;;  %v1128_v19 = vmul.f32 0.5, %v968_v15  ;;  %v1143_v20 = vmul.f32 0.5, %v1061_v16 }
 0x28f   : > { %v1192_v21 = vpack.c.bf16 %v1128_v19, %v1128_v19  ;;  %v1207_v22 = vpack.c.bf16 %v1143_v20, %v1143_v20 }
 0x290   : > { %v2281_v24 = vpop.trf.xlu0 }
 0x291   : > { %v1256_v26 = vunpack.c.l.bf16 %v1192_v21  ;;  %v1594_v27 = vunpack.c.l.b16 %v1192_v21  ;;  %v1271_v28 = vunpack.c.l.bf16 %v1207_v22  ;;  %2104 = vmatmul.msk.bf16.gmra.mxu0 %vm732_vm0, %v2281_v24  ;;  %v1661_v47 = vunpack.c.l.b16 %v1207_v22 }
 0x293   : > { %v1320_v29 = vmul.f32 %v1256_v26, %v1256_v26  ;;  %v1335_v30 = vmul.f32 %v1271_v28, %v1271_v28  ;;  %v2821_v31 = vpack.c.b16 %v1594_v27, %v1593_v25 }
 0x294   : > { %v971_v32 = vpop.f32.mrf.mxu2  ;;  %v1063_v34 = vpop.f32.mrf.mxu3 }
 0x295   : > { %v1393_v35 = vadd.f32 %v1392_v17, %v1320_v29  ;;  %v1413_v36 = vadd.f32 %v1412_v18, %v1335_v30  ;;  %v1129_v37 = vmul.f32 0.5, %v971_v32  ;;  %v1144_v38 = vmul.f32 0.5, %v1063_v34 }
 0x297   : > { %v1193_v39 = vpack.c.bf16 %v1129_v37, %v1129_v37  ;;  %v1208_v41 = vpack.c.bf16 %v1144_v38, %v1144_v38 }
 0x298   : > { %v2282_v43 = vpop.trf.xlu0 }
 0x299   : > { %v1257_v48 = vunpack.c.l.bf16 %v1193_v39  ;;  %v1272_v49 = vunpack.c.l.bf16 %v1208_v41  ;;  %v1662_v50 = vunpack.c.l.b16 %v1208_v41  ;;  %2112 = vmatmul.msk.bf16.gmra.mxu1 %vm732_vm0, %v2282_v43  ;;  %v1595_v1 = vunpack.c.l.b16 %v1193_v39 }
 0x29b   : > { %v1321_v51 = vmul.f32 %v1257_v48, %v1257_v48  ;;  %v1336_v52 = vmul.f32 %v1272_v49, %v1272_v49  ;;  %v2824_v54 = vpack.c.b16 %v1662_v50, %v1661_v47 }
 0x29c   : > { %v973_v55 = vpop.f32.mrf.mxu2  ;;  %v1066_v56 = vpop.f32.mrf.mxu3 }
 0x29d   : > { %v1394_v57 = vadd.f32 %v1393_v35, %v1321_v51  ;;  %v1414_v58 = vadd.f32 %v1413_v36, %v1336_v52  ;;  %v1130_v59 = vmul.f32 0.5, %v973_v55  ;;  %v1145_v60 = vmul.f32 0.5, %v1066_v56 }
 0x29f   : > { %v1194_v61 = vpack.c.bf16 %v1130_v59, %v1130_v59  ;;  %v1209_v62 = vpack.c.bf16 %v1145_v60, %v1145_v60 }
 0x2a0   : > { %v2283_v0 = vpop.trf.xlu0 }
 0x2a1   : > { %v1258_v46 = vunpack.c.l.bf16 %v1194_v61  ;;  %v1596_v44 = vunpack.c.l.b16 %v1194_v61  ;;  %v1273_v40 = vunpack.c.l.bf16 %v1209_v62  ;;  %2105 = vmatmul.msk.bf16.gmra.mxu0 %vm732_vm0, %v2283_v0  ;;  %v1663_v18 = vunpack.c.l.b16 %v1209_v62 }
 0x2a3   : > { %v1322_v3 = vmul.f32 %v1258_v46, %v1258_v46  ;;  %v1337_v4 = vmul.f32 %v1273_v40, %v1273_v40  ;;  %v2827_v5 = vpack.c.b16 %v1596_v44, %v1595_v1 }
 0x2a4   : > { %v976_v63 = vpop.f32.mrf.mxu2  ;;  %v1068_v6 = vpop.f32.mrf.mxu3 }
 0x2a5   : > { %v1395_v8 = vadd.f32 %v1394_v57, %v1322_v3  ;;  %v1415_v10 = vadd.f32 %v1414_v58, %v1337_v4  ;;  %v1131_v11 = vmul.f32 0.5, %v976_v63  ;;  %v1146_v13 = vmul.f32 0.5, %v1068_v6 }
 0x2a7   : > { %v2829_v15 = vpack.c.bf16 %v1131_v11, %v1131_v11  ;;  %v1210_v16 = vpack.c.bf16 %v1146_v13, %v1146_v13 }
 0x2a8   : > { %v2284_v17 = vpop.trf.xlu0 }
 0x2a9   : > { %v1259_v19 = vunpack.c.l.bf16 %v2829_v15  ;;  %v1274_v20 = vunpack.c.l.bf16 %v1210_v16  ;;  %v1664_v21 = vunpack.c.l.b16 %v1210_v16  ;;  %2113 = vmatmul.msk.bf16.gmra.mxu1 %vm732_vm0, %v2284_v17 }
 0x2ab   : > { %v1323_v22 = vmul.f32 %v1259_v19, %v1259_v19  ;;  %v1338_v24 = vmul.f32 %v1274_v20, %v1274_v20  ;;  %v2833_v25 = vpack.c.b16 %v1664_v21, %v1663_v18 }
 0x2ac   : > { %v978_v26 = vpop.f32.mrf.mxu2  ;;  %v1071_v27 = vpop.f32.mrf.mxu3 }
 0x2ad   : > { %v1396_v28 = vadd.f32 %v1395_v8, %v1323_v22  ;;  %v1416_v29 = vadd.f32 %v1415_v10, %v1338_v24  ;;  %v1132_v30 = vmul.f32 0.5, %v978_v26  ;;  %v1147_v32 = vmul.f32 0.5, %v1071_v27 }
 0x2af   : > { %v2835_v34 = vpack.c.bf16 %v1132_v30, %v1132_v30  ;;  %v2837_v35 = vpack.c.bf16 %v1147_v32, %v1147_v32 }
 0x2b0   : > { %v2285_v36 = vpop.trf.xlu0 }
 0x2b1   : > { %v1260_v37 = vunpack.c.l.bf16 %v2835_v34  ;;  %v1275_v38 = vunpack.c.l.bf16 %v2837_v35  ;;  %2106 = vmatmul.msk.bf16.gmra.mxu0 %vm732_vm0, %v2285_v36 }
 0x2b3   : > { %v1324_v39 = vmul.f32 %v1260_v37, %v1260_v37  ;;  %v1339_v41 = vmul.f32 %v1275_v38, %v1275_v38 }
 0x2b4   : > { %v981_v43 = vpop.f32.mrf.mxu2  ;;  %v1073_v47 = vpop.f32.mrf.mxu3 }
 0x2b5   : > { %v1397_v48 = vadd.f32 %v1396_v28, %v1324_v39  ;;  %v1417_v49 = vadd.f32 %v1416_v29, %v1339_v41  ;;  %v1133_v50 = vmul.f32 0.5, %v981_v43  ;;  %v1148_v51 = vmul.f32 0.5, %v1073_v47 }
 0x2b7   : > { %v2842_v52 = vpack.c.bf16 %v1133_v50, %v1133_v50  ;;  %v2844_v55 = vpack.c.bf16 %v1148_v51, %v1148_v51 }
 0x2b8   : > { %v2286_v56 = vpop.trf.xlu0 }
 0x2b9   : > { %v1261_v57 = vunpack.c.l.bf16 %v2842_v52  ;;  %v1276_v58 = vunpack.c.l.bf16 %v2844_v55  ;;  %2114 = vmatmul.msk.bf16.gmra.mxu1 %vm732_vm0, %v2286_v56 }
 0x2bb   : > { %v1325_v59 = vmul.f32 %v1261_v57, %v1261_v57  ;;  %v1340_v60 = vmul.f32 %v1276_v58, %v1276_v58 }
 0x2bc   : > { %v983_v61 = vpop.f32.mrf.mxu2  ;;  %v1076_v62 = vpop.f32.mrf.mxu3 }
 0x2bd   : > { %v1398_v0 = vadd.f32 %v1397_v48, %v1325_v59  ;;  %v1418_v1 = vadd.f32 %v1417_v49, %v1340_v60  ;;  %v1134_v46 = vmul.f32 0.5, %v983_v61  ;;  %v1149_v44 = vmul.f32 0.5, %v1076_v62 }
 0x2bf   : > { %v2849_v40 = vpack.c.bf16 %v1134_v46, %v1134_v46  ;;  %v2851_v3 = vpack.c.bf16 %v1149_v44, %v1149_v44 }
 0x2c0   : > { %v2287_v4 = vpop.trf.xlu0 }
 0x2c1   : > { %v1262_v63 = vunpack.c.l.bf16 %v2849_v40  ;;  %v1277_v6 = vunpack.c.l.bf16 %v2851_v3  ;;  %2107 = vmatmul.msk.bf16.gmra.mxu0 %vm732_vm0, %v2287_v4 }
 0x2c3   : > { %v1326_v8 = vmul.f32 %v1262_v63, %v1262_v63  ;;  %v1341_v10 = vmul.f32 %v1277_v6, %v1277_v6 }
 0x2c4   : > { %v986_v11 = vpop.f32.mrf.mxu2  ;;  %v1078_v13 = vpop.f32.mrf.mxu3 }
 0x2c5   : > { %v1399_v16 = vadd.f32 %v1398_v0, %v1326_v8  ;;  %v1419_v17 = vadd.f32 %v1418_v1, %v1341_v10  ;;  %v1135_v18 = vmul.f32 0.5, %v986_v11  ;;  %v1150_v19 = vmul.f32 0.5, %v1078_v13 }
 0x2c7   : > { %v2856_v20 = vpack.c.bf16 %v1135_v18, %v1135_v18  ;;  %v2858_v21 = vpack.c.bf16 %v1150_v19, %v1150_v19 }
 0x2c8   : > { %v2288_v22 = vpop.trf.xlu0 }
 0x2c9   : > { %v1263_v24 = vunpack.c.l.bf16 %v2856_v20  ;;  %v1278_v26 = vunpack.c.l.bf16 %v2858_v21  ;;  %2115 = vmatmul.msk.bf16.gmra.mxu1 %vm732_vm0, %v2288_v22 }
 0x2cb   : > { %v1327_v27 = vmul.f32 %v1263_v24, %v1263_v24  ;;  %v1342_v28 = vmul.f32 %v1278_v26, %v1278_v26 }
 0x2cc   : > { %v988_v29 = vpop.f32.mrf.mxu2  ;;  %v1081_v30 = vpop.f32.mrf.mxu3 }
 0x2cd   : > { %v1400_v32 = vadd.f32 %v1399_v16, %v1327_v27  ;;  %v1420_v36 = vadd.f32 %v1419_v17, %v1342_v28  ;;  %v1136_v37 = vmul.f32 0.5, %v988_v29  ;;  %v1151_v38 = vmul.f32 0.5, %v1081_v30 }
 0x2cf   : > { %v1200_v39 = vpack.c.bf16 %v1136_v37, %v1136_v37  ;;  %v2863_v41 = vpack.c.bf16 %v1151_v38, %v1151_v38  ;;  %v1601_v38 = vunpack.c.l.b16 %v2856_v20 }
 0x2d0   : > { %v2289_v43 = vpop.trf.xlu0 }
 0x2d1   : > { %v1264_v47 = vunpack.c.l.bf16 %v1200_v39  ;;  %v1279_v48 = vunpack.c.l.bf16 %v2863_v41  ;;  %2108 = vmatmul.msk.bf16.gmra.mxu0 %vm732_vm0, %v2289_v43  ;;  %v1602_v28 = vunpack.c.l.b16 %v1200_v39  ;;  %v1599_v39 = vunpack.c.l.b16 %v2842_v52 }
 0x2d3   : > { %v1328_v49 = vmul.f32 %v1264_v47, %v1264_v47  ;;  %v1343_v50 = vmul.f32 %v1279_v48, %v1279_v48 }
 0x2d4   : > { %v991_v51 = vpop.f32.mrf.mxu2  ;;  %v1083_v56 = vpop.f32.mrf.mxu3 }
 0x2d5   : > { %v1401_v57 = vadd.f32 %v1400_v32, %v1328_v49  ;;  %v1421_v58 = vadd.f32 %v1420_v36, %v1343_v50  ;;  %v1137_v59 = vmul.f32 0.5, %v991_v51  ;;  %v1152_v60 = vmul.f32 0.5, %v1083_v56 }
 0x2d6   : > { %v1600_v49 = vunpack.c.l.b16 %v2849_v40 }
 0x2d7   : > { %v1201_v61 = vpack.c.bf16 %v1137_v59, %v1137_v59  ;;  %v2867_v62 = vpack.c.bf16 %v1152_v60, %v1152_v60 }
 0x2d8   : > { %v2290_v0 = vpop.trf.xlu0  ;;  %v1610_v40 = vpack.c.b16 %v1600_v49, %v1599_v39  ;;  %v1665_v49 = vunpack.c.l.b16 %v2837_v35 }
 0x2d9   : > { %v1265_v1 = vunpack.c.l.bf16 %v1201_v61  ;;  %v1280_v46 = vunpack.c.l.bf16 %v2867_v62  ;;  %2116 = vmatmul.msk.bf16.gmra.mxu1 %vm732_vm0, %v2290_v0  ;;  %v1603_v22 = vunpack.c.l.b16 %v1201_v61 }
 0x2db   : > { %v1329_v44 = vmul.f32 %v1265_v1, %v1265_v1  ;;  %v1344_v4 = vmul.f32 %v1280_v46, %v1280_v46  ;;  %v1598_v46 = vunpack.c.l.b16 %v2835_v34 }
 0x2dc   : > { %v993_v63 = vpop.f32.mrf.mxu2  ;;  %v1086_v6 = vpop.f32.mrf.mxu3 }
 0x2dd   : > { %v1402_v8 = vadd.f32 %v1401_v57, %v1329_v44  ;;  %v1422_v10 = vadd.f32 %v1421_v58, %v1344_v4  ;;  %v1138_v11 = vmul.f32 0.5, %v993_v63  ;;  %v1153_v13 = vmul.f32 0.5, %v1086_v6 }
 0x2de   : > { %v766_v16 = vpop.f32.mrf.mxu0  ;;  %v1611_v58 = vpack.c.b16 %v1602_v28, %v1601_v38  ;;  %v1670_v44 = vunpack.c.l.b16 %v2867_v62  ;;  %v1668_v62 = vunpack.c.l.b16 %v2858_v21 }
 0x2df   : > { %v1202_v17 = vpack.c.bf16 %v1138_v11, %v1138_v11  ;;  %v1217_v18 = vpack.c.bf16 %v1153_v13, %v1153_v13  ;;  %v1091_v19 = vmul.f32 0.5, %v766_v16  ;;  %v1597_v11 = vunpack.c.l.b16 %v2829_v15 }
 0x2e0   : > { %v1669_v16 = vunpack.c.l.b16 %v2863_v41 }
 0x2e1   : > { %v1266_v24 = vunpack.c.l.bf16 %v1202_v17  ;;  %v1604_v26 = vunpack.c.l.b16 %v1202_v17  ;;  %v1281_v27 = vunpack.c.l.bf16 %v1217_v18  ;;  %v1155_v36 = vpack.c.bf16 %v1091_v19, %v1091_v19 }
 0x2e2   : > { %v1671_v61 = vunpack.c.l.b16 %v1217_v18  ;;  %v1679_v15 = vpack.c.b16 %v1670_v44, %v1669_v16 }
 0x2e3   : > { %v1330_v29 = vmul.f32 %v1266_v24, %v1266_v24  ;;  %v1612_v30 = vpack.c.b16 %v1604_v26, %v1603_v22  ;;  %v1345_v32 = vmul.f32 %v1281_v27, %v1281_v27  ;;  %v1219_v59 = vunpack.c.l.bf16 %v1155_v36 }
 0x2e4   : > { %v1088_v37 = vpop.f32.mrf.mxu3  ;;  %v1453_v4 = vunpack.c.l.b16 %v1155_v36  ;;  %v1609_v24 = vpack.c.b16 %v1598_v46, %v1597_v11  ;;  %v1666_v36 = vunpack.c.l.b16 %v2844_v55 }
 0x2e5   : > { %v2872_v43 = vadd.f32 %v1402_v8, %v1330_v29  ;;  %v1423_v47 = vadd.f32 %v1422_v10, %v1345_v32  ;;  %v1154_v48 = vmul.f32 0.5, %v1088_v37  ;;  %1621 = vmatpush.bf16.msra.mxu2 %v1612_v30  ;;  %v1283_v52 = vmul.f32 %v1219_v59, %v1219_v59 }
 0x2e6   : > { %v768_v50 = vpop.f32.mrf.mxu0  ;;  %v861_v51 = vpop.f32.mrf.mxu1  ;;  %v1667_v29 = vunpack.c.l.b16 %v2851_v3  ;;  %v1677_v39 = vpack.c.b16 %v1666_v36, %v1665_v49 }
 0x2e7   : > { %v1218_v56 = vpack.c.bf16 %v1154_v48, %v1154_v48  ;;  %v1092_v57 = vmul.f32 0.5, %v768_v50  ;;  %v1107_v60 = vmul.f32 0.5, %v861_v51 }
 0x2e8   : > { %v1678_v37 = vpack.c.b16 %v1668_v62, %v1667_v29 }
 0x2e9   : > { %v1282_v0 = vunpack.c.l.bf16 %v1218_v56  ;;  %v1672_v1 = vunpack.c.l.b16 %v1218_v56  ;;  %v1156_v20 = vpack.c.bf16 %v1092_v57, %v1092_v57  ;;  %1622 = vmatpush.bf16.msra.mxu2 %v1611_v58  ;;  %v1171_v13 = vpack.c.bf16 %v1107_v60, %v1107_v60 }
 0x2eb   : > { %v1346_v63 = vmul.f32 %v1282_v0, %v1282_v0  ;;  %v1680_v6 = vpack.c.b16 %v1672_v1, %v1671_v61  ;;  %v1220_v8 = vunpack.c.l.bf16 %v1156_v20  ;;  %v1454_v10 = vunpack.c.l.b16 %v1156_v20 }
 0x2ec   : > { %v1235_v30 = vunpack.c.l.bf16 %v1171_v13  ;;  %v1521_v38 = vunpack.c.l.b16 %v1171_v13 }
 0x2ed   : > { %v2880_v17 = vadd.f32 %v1423_v47, %v1346_v63  ;;  %v1284_v18 = vmul.f32 %v1220_v8, %v1220_v8  ;;  %1623 = vmatpush.bf16.msra.mxu2 %v1610_v40  ;;  %1689 = vmatpush.bf16.msra.mxu3 %v1680_v6  ;;  %v2882_v34 = vpack.c.b16 %v1454_v10, %v1453_v4 }
 0x2ee   : > { %v771_v19 = vpop.f32.mrf.mxu0  ;;  %v863_v22 = vpop.f32.mrf.mxu1  ;;  %v1299_v50 = vmul.f32 %v1235_v30, %v1235_v30 }
 0x2ef   : > { %v1347_v26 = vadd.f32 %v1284_v18, %v1283_v52  ;;  %v1093_v27 = vmul.f32 0.5, %v771_v19  ;;  %v1108_v28 = vmul.f32 0.5, %v863_v22 }
 0x2f1   : > { %v1157_v41 = vpack.c.bf16 %v1093_v27, %v1093_v27  ;;  %v1172_v32 = vpack.c.bf16 %v1108_v28, %v1108_v28  ;;  %1624 = vmatpush.bf16.msra.mxu2 %v1609_v24  ;;  %1690 = vmatpush.bf16.msra.mxu3 %v1679_v15 }
 0x2f3   : > { %v1221_v47 = vunpack.c.l.bf16 %v1157_v41  ;;  %v1236_v21 = vunpack.c.l.bf16 %v1172_v32  ;;  %v1522_v48 = vunpack.c.l.b16 %v1172_v32  ;;  %v1455_v35 = vunpack.c.l.b16 %v1157_v41 }
 0x2f5   : > { %v1285_v51 = vmul.f32 %v1221_v47, %v1221_v47  ;;  %v1300_v56 = vmul.f32 %v1236_v21, %v1236_v21  ;;  %1625 = vmatpush.bf16.msra.mxu2 %v2827_v5  ;;  %1691 = vmatpush.bf16.msra.mxu3 %v1678_v37  ;;  %v2889_v3 = vpack.c.b16 %v1522_v48, %v1521_v38 }
 0x2f6   : > { %v773_v57 = vpop.f32.mrf.mxu0  ;;  %v866_v58 = vpop.f32.mrf.mxu1 }
 0x2f7   : > { %v1348_v59 = vadd.f32 %v1347_v26, %v1285_v51  ;;  %v1368_v55 = vadd.f32 %v1300_v56, %v1299_v50  ;;  %v1094_v60 = vmul.f32 0.5, %v773_v57  ;;  %v1109_v61 = vmul.f32 0.5, %v866_v58 }
 0x2f9   : > { %v1158_v0 = vpack.c.bf16 %v1094_v60, %v1094_v60  ;;  %v1173_v1 = vpack.c.bf16 %v1109_v61, %v1109_v61  ;;  %1626 = vmatpush.bf16.msra.mxu2 %v2821_v31  ;;  %1692 = vmatpush.bf16.msra.mxu3 %v1677_v39 }
 0x2fb   : > { %v1222_v20 = vunpack.c.l.bf16 %v1158_v0  ;;  %v1456_v46 = vunpack.c.l.b16 %v1158_v0  ;;  %v1237_v44 = vunpack.c.l.bf16 %v1173_v1  ;;  %v1523_v16 = vunpack.c.l.b16 %v1173_v1 }
 0x2fd   : > { %v1286_v5 = vmul.f32 %v1222_v20, %v1222_v20  ;;  %v1301_v4 = vmul.f32 %v1237_v44, %v1237_v44  ;;  %1627 = vmatpush.bf16.msra.mxu2 %v2815_v45  ;;  %1693 = vmatpush.bf16.msra.mxu3 %v2833_v25  ;;  %v2894_v40 = vpack.c.b16 %v1456_v46, %v1455_v35 }
 0x2fe   : > { %v776_v63 = vpop.f32.mrf.mxu0  ;;  %v868_v6 = vpop.f32.mrf.mxu1 }
 0x2ff   : > { %v1349_v8 = vadd.f32 %v1348_v59, %v1286_v5  ;;  %v1369_v10 = vadd.f32 %v1368_v55, %v1301_v4  ;;  %v1095_v11 = vmul.f32 0.5, %v776_v63  ;;  %v1110_v52 = vmul.f32 0.5, %v868_v6 }
 0x301   : > { %v1159_v31 = vpack.c.bf16 %v1095_v11, %v1095_v11  ;;  %v1174_v13 = vpack.c.bf16 %v1110_v52, %v1110_v52  ;;  %1628 = vmatpush.bf16.msra.mxu2 %v2809_v23  ;;  %1694 = vmatpush.bf16.msra.mxu3 %v2824_v54 }
 0x303   : > { %v1223_v18 = vunpack.c.l.bf16 %v1159_v31  ;;  %v1238_v62 = vunpack.c.l.bf16 %v1174_v13  ;;  %v1524_v45 = vunpack.c.l.b16 %v1174_v13  ;;  %v1457_v30 = vunpack.c.l.b16 %v1159_v31 }
 0x304   : > { %1629 = vmatmul.bf16.vlgmr.msra.gmra.mxu2 %v2797_v53 }
 0x305   : > { %v1287_v25 = vmul.f32 %v1223_v18, %v1223_v18  ;;  %v1302_v19 = vmul.f32 %v1238_v62, %v1238_v62  ;;  %1695 = vmatpush.bf16.msra.mxu3 %v2818_v14  ;;  %v2900_v22 = vpack.c.b16 %v1524_v45, %v1523_v16 }
 0x306   : > { %v778_v24 = vpop.f32.mrf.mxu0  ;;  %v871_v26 = vpop.f32.mrf.mxu1 }
 0x307   : > { %v1350_v27 = vadd.f32 %v1349_v8, %v1287_v25  ;;  %v1370_v28 = vadd.f32 %v1369_v10, %v1302_v19  ;;  %v1096_v15 = vmul.f32 0.5, %v778_v24  ;;  %v1111_v23 = vmul.f32 0.5, %v871_v26 }
 0x309   : > { %v1160_v29 = vpack.c.bf16 %v1096_v15, %v1096_v15  ;;  %v1175_v54 = vpack.c.bf16 %v1111_v23, %v1111_v23  ;;  %1696 = vmatpush.bf16.msra.mxu3 %v2812_v42 }
 0x30b   : > { %v1224_v41 = vunpack.c.l.bf16 %v1160_v29  ;;  %v1458_v32 = vunpack.c.l.b16 %v1160_v29  ;;  %v1239_v53 = vunpack.c.l.bf16 %v1175_v54  ;;  %v1525_v57 = vunpack.c.l.b16 %v1175_v54 }
 0x30c   : > { %1697 = vmatmul.bf16.vlgmr.msra.gmra.mxu3 %v2802_v2 }
 0x30d   : > { %v1288_v36 = vmul.f32 %v1224_v41, %v1224_v41  ;;  %v1303_v14 = vmul.f32 %v1239_v53, %v1239_v53  ;;  %v2904_v37 = vpack.c.b16 %v1458_v32, %v1457_v30 }
 0x30e   : > { %v781_v38 = vpop.f32.mrf.mxu0  ;;  %v873_v47 = vpop.f32.mrf.mxu1 }
 0x30f   : > { %v1351_v21 = vadd.f32 %v1350_v27, %v1288_v36  ;;  %v1371_v48 = vadd.f32 %v1370_v28, %v1303_v14  ;;  %v1097_v49 = vmul.f32 0.5, %v781_v38  ;;  %v1112_v50 = vmul.f32 0.5, %v873_v47 }
 0x311   : > { %v1161_v51 = vpack.c.bf16 %v1097_v49, %v1097_v49  ;;  %v1176_v56 = vpack.c.bf16 %v1112_v50, %v1112_v50 }
 0x313   : > { %v1225_v42 = vunpack.c.l.bf16 %v1161_v51  ;;  %v1240_v58 = vunpack.c.l.bf16 %v1176_v56  ;;  %v1526_v39 = vunpack.c.l.b16 %v1176_v56  ;;  %v1459_v5 = vunpack.c.l.b16 %v1161_v51 }
 0x315   : > { %v1289_v59 = vmul.f32 %v1225_v42, %v1225_v42  ;;  %v1304_v55 = vmul.f32 %v1240_v58, %v1240_v58  ;;  %v2906_v60 = vpack.c.b16 %v1526_v39, %v1525_v57 }
 0x316   : > { %v783_v2 = vpop.f32.mrf.mxu0  ;;  %v876_v61 = vpop.f32.mrf.mxu1 }
 0x317   : > { %v1352_v0 = vadd.f32 %v1351_v21, %v1289_v59  ;;  %v1372_v1 = vadd.f32 %v1371_v48, %v1304_v55  ;;  %v1098_v35 = vmul.f32 0.5, %v783_v2  ;;  %v1113_v20 = vmul.f32 0.5, %v876_v61 }
 0x319   : > { %v1162_v46 = vpack.c.bf16 %v1098_v35, %v1098_v35  ;;  %v1177_v44 = vpack.c.bf16 %v1113_v20, %v1113_v20 }
 0x31b   : > { %v1226_v4 = vunpack.c.l.bf16 %v1162_v46  ;;  %v1460_v63 = vunpack.c.l.b16 %v1162_v46  ;;  %v1241_v6 = vunpack.c.l.bf16 %v1177_v44  ;;  %v1527_v19 = vunpack.c.l.b16 %v1177_v44 }
 0x31d   : > { %v1290_v8 = vmul.f32 %v1226_v4, %v1226_v4  ;;  %v1305_v10 = vmul.f32 %v1241_v6, %v1241_v6  ;;  %v2908_v11 = vpack.c.b16 %v1460_v63, %v1459_v5 }
 0x31e   : > { %v786_v52 = vpop.f32.mrf.mxu0  ;;  %v878_v31 = vpop.f32.mrf.mxu1 }
 0x31f   : > { %v1353_v13 = vadd.f32 %v1352_v0, %v1290_v8  ;;  %v1373_v16 = vadd.f32 %v1372_v1, %v1305_v10  ;;  %v1099_v18 = vmul.f32 0.5, %v786_v52  ;;  %v1114_v62 = vmul.f32 0.5, %v878_v31 }
 0x321   : > { %v2910_v45 = vpack.c.bf16 %v1099_v18, %v1099_v18  ;;  %v1178_v25 = vpack.c.bf16 %v1114_v62, %v1114_v62 }
 0x323   : > { %v1227_v24 = vunpack.c.l.bf16 %v2910_v45  ;;  %v1242_v26 = vunpack.c.l.bf16 %v1178_v25  ;;  %v1528_v27 = vunpack.c.l.b16 %v1178_v25 }
 0x325   : > { %v1291_v28 = vmul.f32 %v1227_v24, %v1227_v24  ;;  %v1306_v15 = vmul.f32 %v1242_v26, %v1242_v26  ;;  %v2913_v23 = vpack.c.b16 %v1528_v27, %v1527_v19 }
 0x326   : > { %v788_v29 = vpop.f32.mrf.mxu0  ;;  %v881_v54 = vpop.f32.mrf.mxu1 }
 0x327   : > { %v1354_v30 = vadd.f32 %v1353_v13, %v1291_v28  ;;  %v1374_v41 = vadd.f32 %v1373_v16, %v1306_v15  ;;  %v1100_v32 = vmul.f32 0.5, %v788_v29  ;;  %v1115_v53 = vmul.f32 0.5, %v881_v54 }
 0x329   : > { %v2915_v36 = vpack.c.bf16 %v1100_v32, %v1100_v32  ;;  %v2917_v14 = vpack.c.bf16 %v1115_v53, %v1115_v53 }
 0x32b   : > { %v1228_v38 = vunpack.c.l.bf16 %v2915_v36  ;;  %v1243_v47 = vunpack.c.l.bf16 %v2917_v14 }
 0x32d   : > { %v1292_v21 = vmul.f32 %v1228_v38, %v1228_v38  ;;  %v1307_v48 = vmul.f32 %v1243_v47, %v1243_v47 }
 0x32e   : > { %v791_v49 = vpop.f32.mrf.mxu0  ;;  %v883_v50 = vpop.f32.mrf.mxu1 }
 0x32f   : > { %v1355_v51 = vadd.f32 %v1354_v30, %v1292_v21  ;;  %v1375_v56 = vadd.f32 %v1374_v41, %v1307_v48  ;;  %v1101_v57 = vmul.f32 0.5, %v791_v49  ;;  %v1116_v42 = vmul.f32 0.5, %v883_v50 }
 0x331   : > { %v2921_v58 = vpack.c.bf16 %v1101_v57, %v1101_v57  ;;  %v2923_v39 = vpack.c.bf16 %v1116_v42, %v1116_v42 }
 0x333   : > { %v1229_v59 = vunpack.c.l.bf16 %v2921_v58  ;;  %v1244_v55 = vunpack.c.l.bf16 %v2923_v39 }
 0x335   : > { %v1293_v2 = vmul.f32 %v1229_v59, %v1229_v59  ;;  %v1308_v61 = vmul.f32 %v1244_v55, %v1244_v55 }
 0x336   : > { %v793_v0 = vpop.f32.mrf.mxu0  ;;  %v886_v1 = vpop.f32.mrf.mxu1 }
 0x337   : > { %v1356_v35 = vadd.f32 %v1355_v51, %v1293_v2  ;;  %v1376_v20 = vadd.f32 %v1375_v56, %v1308_v61  ;;  %v1102_v46 = vmul.f32 0.5, %v793_v0  ;;  %v1117_v44 = vmul.f32 0.5, %v886_v1 }
 0x339   : > { %v2927_v5 = vpack.c.bf16 %v1102_v46, %v1102_v46  ;;  %v2929_v4 = vpack.c.bf16 %v1117_v44, %v1117_v44 }
 0x33b   : > { %v1230_v63 = vunpack.c.l.bf16 %v2927_v5  ;;  %v1245_v6 = vunpack.c.l.bf16 %v2929_v4 }
 0x33d   : > { %v1294_v8 = vmul.f32 %v1230_v63, %v1230_v63  ;;  %v1309_v10 = vmul.f32 %v1245_v6, %v1245_v6 }
 0x33e   : > { %v796_v52 = vpop.f32.mrf.mxu0  ;;  %v888_v31 = vpop.f32.mrf.mxu1 }
 0x33f   : > { %v1357_v13 = vadd.f32 %v1356_v35, %v1294_v8  ;;  %v1377_v16 = vadd.f32 %v1376_v20, %v1309_v10  ;;  %v1103_v18 = vmul.f32 0.5, %v796_v52  ;;  %v1118_v62 = vmul.f32 0.5, %v888_v31 }
 0x341   : > { %v1167_v25 = vpack.c.bf16 %v1103_v18, %v1103_v18  ;;  %v2933_v19 = vpack.c.bf16 %v1118_v62, %v1118_v62 }
 0x343   : > { %v1231_v24 = vunpack.c.l.bf16 %v1167_v25  ;;  %v1246_v26 = vunpack.c.l.bf16 %v2933_v19 }
 0x345   : > { %v1295_v27 = vmul.f32 %v1231_v24, %v1231_v24  ;;  %v1310_v28 = vmul.f32 %v1246_v26, %v1246_v26 }
 0x346   : > { %v798_v15 = vpop.f32.mrf.mxu0  ;;  %v891_v29 = vpop.f32.mrf.mxu1 }
 0x347   : > { %v1358_v54 = vadd.f32 %v1357_v13, %v1295_v27  ;;  %v1378_v30 = vadd.f32 %v1377_v16, %v1310_v28  ;;  %v1104_v41 = vmul.f32 0.5, %v798_v15  ;;  %v1119_v32 = vmul.f32 0.5, %v891_v29 }
 0x348   : > { %v1465_v15 = vunpack.c.l.b16 %v1167_v25 }
 0x349   : > { %v1168_v53 = vpack.c.bf16 %v1104_v41, %v1104_v41  ;;  %v1183_v38 = vpack.c.bf16 %v1119_v32, %v1119_v32  ;;  %v1464_v41 = vunpack.c.l.b16 %v2927_v5 }
 0x34b   : > { %v1232_v47 = vunpack.c.l.bf16 %v1168_v53  ;;  %v1247_v21 = vunpack.c.l.bf16 %v1183_v38  ;;  %v1466_v62 = vunpack.c.l.b16 %v1168_v53  ;;  %v1462_v53 = vunpack.c.l.b16 %v2915_v36 }
 0x34d   : > { %v1296_v48 = vmul.f32 %v1232_v47, %v1232_v47  ;;  %v1311_v49 = vmul.f32 %v1247_v21, %v1247_v21  ;;  %v1475_v47 = vpack.c.b16 %v1466_v62, %v1465_v15  ;;  %v1463_v21 = vunpack.c.l.b16 %v2921_v58  ;;  %v2324_v58 = vld [vmem:[%s3047_s3] ss:$0 sm:$0xff] }
 0x34e   : > { %v801_v50 = vpop.f32.mrf.mxu0  ;;  %v893_v51 = vpop.f32.mrf.mxu1  ;;  %v640_v5 = vadd.f32 %v2324_v58, %v2778_v7  ;;  %v686_v7 = vmax.f32 %v2780_v9, 0.0 }
 0x34f   : > { %v1359_v56 = vadd.f32 %v1358_v54, %v1296_v48  ;;  %v1379_v57 = vadd.f32 %v1378_v30, %v1311_v49  ;;  %v1105_v42 = vmul.f32 0.5, %v801_v50  ;;  %v1120_v59 = vmul.f32 0.5, %v893_v51 }
 0x350   : > { %v1474_v25 = vpack.c.b16 %v1464_v41, %v1463_v21 }
 0x351   : > { %v1169_v55 = vpack.c.bf16 %v1105_v42, %v1105_v42  ;;  %v1184_v2 = vpack.c.bf16 %v1120_v59, %v1120_v59  ;;  %v1461_v42 = vunpack.c.l.b16 %v2910_v45  ;;  %v1533_v59 = vunpack.c.l.b16 %v1183_v38 }
 0x352   : > { %v669_v45 = vadd.f32 %v2783_v12, %v640_v5  ;;  %v1530_v38 = vunpack.c.l.b16 %v2923_v39 }
 0x353   : > { %v1233_v61 = vunpack.c.l.bf16 %v1169_v55  ;;  %v1248_v0 = vunpack.c.l.bf16 %v1184_v2  ;;  %v1467_v31 = vunpack.c.l.b16 %v1169_v55  ;;  %v1534_v51 = vunpack.c.l.b16 %v1184_v2 }
 0x354   : > { %v1531_v2 = vunpack.c.l.b16 %v2929_v4  ;;  %v694_v4 = vpack.c.bf16 %v686_v7, %v686_v7 }
 0x355   : > { %v1297_v1 = vmul.f32 %v1233_v61, %v1233_v61  ;;  %v1312_v35 = vmul.f32 %v1248_v0, %v1248_v0  ;;  %v1532_v61 = vunpack.c.l.b16 %v2933_v19  ;;  %v1473_v0 = vpack.c.b16 %v1462_v53, %v1461_v42 }
 0x356   : > { %v803_v20 = vpop.f32.mrf.mxu0  ;;  %v896_v46 = vpop.f32.mrf.mxu1  ;;  %v1543_v36 = vpack.c.b16 %v1534_v51, %v1533_v59  ;;  %v1433_v12 = vunpack.c.l.b16 %v694_v4 }
 0x357   : > { %v1360_v44 = vadd.f32 %v1359_v56, %v1297_v1  ;;  %v1380_v63 = vadd.f32 %v1379_v57, %v1312_v35  ;;  %v1106_v6 = vmul.f32 0.5, %v803_v20  ;;  %v1121_v8 = vmul.f32 0.5, %v896_v46 }
 0x358   : > { %v1542_v1 = vpack.c.b16 %v1532_v61, %v1531_v2  ;;  %v1529_v35 = vunpack.c.l.b16 %v2917_v14  ;;  %v687_v20 = vmax.f32 %v669_v45, 0.0 }
 0x359   : > { %v1170_v10 = vpack.c.bf16 %v1106_v6, %v1106_v6  ;;  %v1185_v52 = vpack.c.bf16 %v1121_v8, %v1121_v8  ;;  %v1719_v6 = vlaneseq }
 0x35a   : > { %v1541_v19 = vpack.c.b16 %v1530_v38, %v1529_v35  ;;  %v695_v46 = vpack.c.bf16 %v687_v20, %v687_v20 }
 0x35b   : > { %v1234_v13 = vunpack.c.l.bf16 %v1170_v10  ;;  %v1468_v16 = vunpack.c.l.b16 %v1170_v10  ;;  %v1249_v18 = vunpack.c.l.bf16 %v1185_v52  ;;  %v1535_v48 = vunpack.c.l.b16 %v1185_v52 }
 0x35c   : > { %v1434_v39 = vunpack.c.l.b16 %v695_v46  ;;  %v1720_v52 = vand.u32 127, %v1719_v6 }
 0x35d   : > { %v1298_v24 = vmul.f32 %v1234_v13, %v1234_v13  ;;  %v1476_v26 = vpack.c.b16 %v1468_v16, %v1467_v31  ;;  %v1313_v27 = vmul.f32 %v1249_v18, %v1249_v18 }
 0x35e   : > { %v898_v28 = vpop.f32.mrf.mxu1  ;;  %vm1721_vm1 = vcmp.lt.s32.totalorder %v1720_v52, 4 }
 0x35f   : > { %v1361_v29 = vadd.f32 %v1360_v44, %v1298_v24  ;;  %v1381_v54 = vadd.f32 %v1380_v63, %v1313_v27  ;;  %v1122_v30 = vmul.f32 0.5, %v898_v28  ;;  %1485 = vmatpush.bf16.msra.mxu0 %v1476_v26  ;;  %v1404_v63 = vrot.slane %v2872_v43, 4 }
 0x361   : > { %v1186_v32 = vpack.c.bf16 %v1122_v30, %v1122_v30  ;;  %v1362_v9 = vrot.slane %v1361_v29, 4 }
 0x363   : > { %v1250_v49 = vunpack.c.l.bf16 %v1186_v32  ;;  %v1536_v50 = vunpack.c.l.b16 %v1186_v32  ;;  %1486 = vmatpush.bf16.msra.mxu0 %v1475_v47 }
 0x365   : > { %v1314_v56 = vmul.f32 %v1250_v49, %v1250_v49  ;;  %v1544_v57 = vpack.c.b16 %v1536_v50, %v1535_v48 }
 0x367   : > { %v1382_v55 = vadd.f32 %v1381_v54, %v1314_v56  ;;  %1487 = vmatpush.bf16.msra.mxu0 %v1474_v25  ;;  %1553 = vmatpush.bf16.msra.mxu1 %v1544_v57 }
 0x369   : > { %v1383_v14 = vrot.slane %v1382_v55, 4 }
 0x36b   : > { %1488 = vmatpush.bf16.msra.mxu0 %v1473_v0  ;;  %1554 = vmatpush.bf16.msra.mxu1 %v1543_v36  ;;  %v1384_v44 = vadd.f32 %v1383_v14, %v1382_v55 }
 0x36d   : > { %v1385_v8 = vrot.slane %v1384_v44, 2 }
 0x36f   : > { %1489 = vmatpush.bf16.msra.mxu0 %v2908_v11  ;;  %1555 = vmatpush.bf16.msra.mxu1 %v1542_v1  ;;  %v1435_v11 = vpack.c.b16 %v1434_v39, %v1433_v12 }
 0x373   : > { %1490 = vmatpush.bf16.msra.mxu0 %v2904_v37  ;;  %1556 = vmatpush.bf16.msra.mxu1 %v1541_v19  ;;  %v1363_v37 = vadd.f32 %v1362_v9, %v1361_v29 }
 0x377   : > { %1491 = vmatpush.bf16.msra.mxu0 %v2894_v40  ;;  %1557 = vmatpush.bf16.msra.mxu1 %v2913_v23  ;;  %v1364_v40 = vrot.slane %v1363_v37, 2 }
 0x379   : > { %v1365_v23 = vadd.f32 %v1364_v40, %v1363_v37 }
 0x37b   : > { %1492 = vmatpush.bf16.msra.mxu0 %v2882_v34  ;;  %1558 = vmatpush.bf16.msra.mxu1 %v2906_v60  ;;  %v1366_v34 = vrot.slane %v1365_v23, 1  ;;  %v1405_v60 = vadd.f32 %v1404_v63, %v2872_v43 }
 0x37d   : > { %v1367_v31 = vadd.f32 %v1366_v34, %v1365_v23  ;;  %v1406_v13 = vrot.slane %v1405_v60, 2 }
 0x37e   : > { %1493 = vmatmul.bf16.vlgmr.msra.gmra.mxu0 %v1435_v11 }
 0x37f   : > { %1559 = vmatpush.bf16.msra.mxu1 %v2900_v22  ;;  %v1407_v27 = vadd.f32 %v1406_v13, %v1405_v60 }
 0x381   : > { %v1408_v30 = vrot.slane %v1407_v27, 1 }
 0x383   : > { %1560 = vmatpush.bf16.msra.mxu1 %v2889_v3  ;;  %v1386_v3 = vadd.f32 %v1385_v8, %v1384_v44  ;;  %v1409_v50 = vadd.f32 %v1408_v30, %v1407_v27 }
 0x385   : > { %v1387_v62 = vrot.slane %v1386_v3, 1 }
 0x386   : > { %1561 = vmatmul.bf16.vlgmr.msra.gmra.mxu1 %v2791_v33  ;;  %v1425_v33 = vrot.slane %v2880_v17, 4 }
 0x387   : > { %v1630_v26 = vpop.f32.mrf.mxu2  ;;  %v1388_v54 = vadd.f32 %v1387_v62, %v1386_v3 }
 0x388   : > { %v1426_v24 = vadd.f32 %v1425_v33, %v2880_v17  ;;  %v1707_v21 = vmul.f32 2.0, %v1630_v26 }
 0x38a   : > { %v1427_v41 = vrot.slane %v1426_v24, 2  ;;  %v1715_v57 = vsub.f32 %v1707_v21, %v1409_v50 }
 0x38c   : > { %v1428_v17 = vadd.f32 %v1427_v41, %v1426_v24  ;;  %v1726_v5 = vsel %vm1721_vm1, %v1715_v57, -1e+30 }
 0x38e   : > { %v1429_v42 = vrot.slane %v1428_v17, 1 }
 0x38f   : > { %v1698_v53 = vpop.f32.mrf.mxu3  ;;  %v1632_v25 = vpop.f32.mrf.mxu2 }
 0x390   : > { %v1708_v55 = vmul.f32 2.0, %v1632_v25  ;;  %v1709_v58 = vmul.f32 2.0, %v1698_v53  ;;  %v1430_v0 = vadd.f32 %v1429_v42, %v1428_v17 }
 0x392   : > { %v1716_v36 = vsub.f32 %v1708_v55, %v1409_v50  ;;  %v1717_v2 = vsub.f32 %v1709_v58, %v1430_v0 }
 0x394   : > { %v1728_v1 = vsel %vm1721_vm1, %v1717_v2, -1e+30  ;;  %v1727_v35 = vsel %vm1721_vm1, %v1716_v36, -1e+30 }
 0x397   : > { %v1700_v45 = vpop.f32.mrf.mxu3 }
 0x398   : > { %v1710_v38 = vmul.f32 2.0, %v1700_v45 }
 0x39a   : > { %v1718_v7 = vsub.f32 %v1710_v38, %v1430_v0 }
 0x39c   : > { %v1729_v20 = vsel %vm1721_vm1, %v1718_v7, -1e+30 }
 0x3fb   : > { %v1494_v10 = vpop.f32.mrf.mxu0 }
 0x3fc   : > { %v1703_v22 = vmul.f32 2.0, %v1494_v10 }
 0x3fe   : > { %v1711_v16 = vsub.f32 %v1703_v22, %v1367_v31 }
 0x400   : > { %v1722_v18 = vsel %vm1721_vm1, %v1711_v16, -1e+30 }
 0x401   : > { %1730 = vmax.xlane.f32.xlu1 %v1722_v18 }
 0x403   : > { %v1496_v28 = vpop.f32.mrf.mxu0  ;;  %v1562_v43 = vpop.f32.mrf.mxu1 }
 0x404   : > { %v1704_v15 = vmul.f32 2.0, %v1496_v28  ;;  %v1705_v29 = vmul.f32 2.0, %v1562_v43 }
 0x406   : > { %v1712_v32 = vsub.f32 %v1704_v15, %v1367_v31  ;;  %v1713_v47 = vsub.f32 %v1705_v29, %v1388_v54 }
 0x408   : > { %v1723_v48 = vsel %vm1721_vm1, %v1712_v32, -1e+30  ;;  %v1724_v49 = vsel %vm1721_vm1, %v1713_v47, -1e+30 }
 0x409   : > { %1732 = vmax.xlane.f32.xlu1 %v1723_v48  ;;  %1734 = vmax.xlane.f32.xlu2 %v1724_v49 }
 0x40b   : > { %v1564_v51 = vpop.f32.mrf.mxu1 }
 0x40c   : > { %v1706_v56 = vmul.f32 2.0, %v1564_v51 }
 0x40e   : > { %v1714_v59 = vsub.f32 %v1706_v56, %v1388_v54 }
 0x410   : > { %v1725_v61 = vsel %vm1721_vm1, %v1714_v59, -1e+30 }
 0x411   : > { %1738 = vmax.xlane.f32.xlu1 %v1726_v5  ;;  %1736 = vmax.xlane.f32.xlu2 %v1725_v61 }
 0x419   : > { %1742 = vmax.xlane.f32.xlu1 %v1728_v1  ;;  %1740 = vmax.xlane.f32.xlu2 %v1727_v35 }
 0x421   : > { %1744 = vmax.xlane.f32.xlu2 %v1729_v20 }
 0x474   : > { %v1731_v19 = vpop.xlane.xlu1 %1730 }
 0x475   : > { %v1746_v4 = vsub.f32 %v1722_v18, %v1731_v19 }
 0x477   : > { %v1754_v46 = vmul.f32 1.442695, %v1746_v4 }
 0x479   : > { %2292 = vpow2.f32 %v1754_v46 }
 0x47c   : > { %v1733_v12 = vpop.xlane.xlu1 %1732  ;;  %v1735_v39 = vpop.xlane.xlu2 %1734 }
 0x47d   : > { %v2971_v11 = vsub.f32 %v1723_v48, %v1733_v12  ;;  %v2973_v9 = vsub.f32 %v1724_v49, %v1735_v39 }
 0x47f   : > { %v2293_v37 = vpop.eup %2292  ;;  %v1756_v14 = vmul.f32 1.442695, %v2971_v11  ;;  %v1758_v40 = vmul.f32 1.442695, %v2973_v9 }
 0x480   : > { %1770 = vadd.xlane.f32.xlu1 %v2293_v37 }
 0x481   : > { %2294 = vpow2.f32 %v1756_v14 }
 0x482   : > { %2296 = vpow2.f32 %v1758_v40 }
 0x484   : > { %v1739_v44 = vpop.xlane.xlu1 %1738  ;;  %v1737_v23 = vpop.xlane.xlu2 %1736 }
 0x485   : > { %v2977_v63 = vsub.f32 %v1726_v5, %v1739_v44  ;;  %v2979_v6 = vsub.f32 %v1725_v61, %v1737_v23 }
 0x487   : > { %v2295_v34 = vpop.eup %2294  ;;  %v1762_v8 = vmul.f32 1.442695, %v2977_v63  ;;  %v1760_v60 = vmul.f32 1.442695, %v2979_v6 }
 0x488   : > { %v2297_v10 = vpop.eup %2296  ;;  %1772 = vadd.xlane.f32.xlu2 %v2295_v34 }
 0x489   : > { %2298 = vpow2.f32 %v1762_v8  ;;  %1774 = vadd.xlane.f32.xlu1 %v2297_v10 }
 0x48a   : > { %2300 = vpow2.f32 %v1760_v60 }
 0x48c   : > { %v1743_v52 = vpop.xlane.xlu1 %1742  ;;  %v1741_v22 = vpop.xlane.xlu2 %1740 }
 0x48d   : > { %v2983_v31 = vsub.f32 %v1728_v1, %v1743_v52  ;;  %v2985_v3 = vsub.f32 %v1727_v35, %v1741_v22 }
 0x48f   : > { %v2299_v33 = vpop.eup %2298  ;;  %v1766_v13 = vmul.f32 1.442695, %v2983_v31  ;;  %v1764_v16 = vmul.f32 1.442695, %v2985_v3 }
 0x490   : > { %v2301_v18 = vpop.eup %2300 }
 0x491   : > { %2302 = vpow2.f32 %v1766_v13  ;;  %1778 = vadd.xlane.f32.xlu1 %v2299_v33  ;;  %1776 = vadd.xlane.f32.xlu2 %v2301_v18 }
 0x492   : > { %2304 = vpow2.f32 %v1764_v16 }
 0x494   : > { %v1745_v62 = vpop.xlane.xlu2 %1744 }
 0x495   : > { %v2989_v24 = vsub.f32 %v1729_v20, %v1745_v62 }
 0x497   : > { %v2303_v26 = vpop.eup %2302  ;;  %v1768_v27 = vmul.f32 1.442695, %v2989_v24 }
 0x498   : > { %v2305_v28 = vpop.eup %2304 }
 0x499   : > { %2306 = vpow2.f32 %v1768_v27  ;;  %1782 = vadd.xlane.f32.xlu1 %v2303_v26  ;;  %1780 = vadd.xlane.f32.xlu2 %v2305_v28 }
 0x49f   : > { %v2307_v43 = vpop.eup %2306 }
 0x4a1   : > { %1784 = vadd.xlane.f32.xlu2 %v2307_v43 }
 0x4f3   : > { %v1771_v15 = vpop.xlane.xlu1 %1770 }
 0x4f4   : > { %2308 = vlog2.f32 %v1771_v15 }
 0x4fa   : > { %v2309_v29 = vpop.eup %2308 }
 0x4fb   : > { %v1787_v54 = vmul.f32 0.6931472, %v2309_v29  ;;  %v1773_v30 = vpop.xlane.xlu2 %1772 }
 0x4fc   : > { %v1775_v41 = vpop.xlane.xlu1 %1774  ;;  %2310 = vlog2.f32 %v1773_v30 }
 0x4fd   : > { %v1802_v32 = vsub.f32 %v1746_v4, %v1787_v54  ;;  %2312 = vlog2.f32 %v1775_v41 }
 0x4ff   : > { %1810 = vst [vmem:[%s2993_s13] sm:$0xff] %v1802_v32 }
 0x502   : > { %v2311_v47 = vpop.eup %2310 }
 0x503   : > { %v2313_v21 = vpop.eup %2312  ;;  %v1789_v48 = vmul.f32 0.6931472, %v2311_v47 }
 0x504   : > { %v1791_v49 = vmul.f32 0.6931472, %v2313_v21  ;;  %v1779_v50 = vpop.xlane.xlu1 %1778  ;;  %v1777_v17 = vpop.xlane.xlu2 %1776 }
 0x505   : > { %v1803_v53 = vsub.f32 %v2971_v11, %v1789_v48  ;;  %2314 = vlog2.f32 %v1779_v50 }
 0x506   : > { %v1804_v51 = vsub.f32 %v2973_v9, %v1791_v49  ;;  %2316 = vlog2.f32 %v1777_v17 }
 0x507   : > { %1811 = vst [vmem:[%s2993_s13 + $0x8] sm:$0xff] %v1803_v53 }
 0x508   : > { %1812 = vst [vmem:[%s2993_s13 + $0x10] sm:$0xff] %v1804_v51 }
 0x50b   : > { %v2315_v56 = vpop.eup %2314 }
 0x50c   : > { %v2317_v57 = vpop.eup %2316  ;;  %v1795_v25 = vmul.f32 0.6931472, %v2315_v56  ;;  %v1783_v42 = vpop.xlane.xlu1 %1782 }
 0x50d   : > { %v1781_v59 = vpop.xlane.xlu2 %1780  ;;  %v1793_v55 = vmul.f32 0.6931472, %v2317_v57  ;;  %2318 = vlog2.f32 %v1783_v42 }
 0x50e   : > { %v1806_v58 = vsub.f32 %v2977_v63, %v1795_v25  ;;  %2320 = vlog2.f32 %v1781_v59 }
 0x50f   : > { %v1805_v5 = vsub.f32 %v2979_v6, %v1793_v55 }
 0x510   : > { %1814 = vst [vmem:[%s2993_s13 + $0x20] sm:$0xff] %v1806_v58 }
 0x511   : > { %1813 = vst [vmem:[%s2993_s13 + $0x18] sm:$0xff] %v1805_v5 }
 0x513   : > { %v2319_v61 = vpop.eup %2318 }
 0x514   : > { %v2321_v0 = vpop.eup %2320  ;;  %v1799_v36 = vmul.f32 0.6931472, %v2319_v61 }
 0x515   : > { %v1785_v2 = vpop.xlane.xlu2 %1784  ;;  %v1797_v45 = vmul.f32 0.6931472, %v2321_v0 }
 0x516   : > { %2322 = vlog2.f32 %v1785_v2  ;;  %v1808_v38 = vsub.f32 %v2983_v31, %v1799_v36 }
 0x517   : > { %v1807_v1 = vsub.f32 %v2985_v3, %v1797_v45 }
 0x518   : > { %1816 = vst [vmem:[%s2993_s13 + $0x30] sm:$0xff] %v1808_v38 }
 0x519   : > { %1815 = vst [vmem:[%s2993_s13 + $0x28] sm:$0xff] %v1807_v1 }
 0x51c   : > { %v2323_v35 = vpop.eup %2322 }
 0x51d   : > { %v1801_v7 = vmul.f32 0.6931472, %v2323_v35 }
 0x51f   : > { %v1809_v20 = vsub.f32 %v2989_v24, %v1801_v7 }
 0x521   : > { %1817 = vst [vmem:[%s2993_s13 + $0x38] sm:$0xff] %v1809_v20 }
 0x522   : > { %2472 = shalt.err (!%p2469_p9)
}
 0x523   : > { %s2531_s4 = smov 128   ;;  %s2532_s11 = smov 8  }
 0x524   : > { %2190 = dma.vmem_to_hbm [thread:$0]  (%p2629_p3), %s1833_s10, 1024, %s1835_s12, %s1819_s22, %s2531_s4, %s2531_s4, %s2532_s11  }
 0x525 PF: > { %s1849_s24 = sand.u32 1, %s2511_s18   ;;  %p3064_p12 = scmp.ge.s32.totalorder %s2523_s21, 2 }
 0x526   : > { %s1850_s26 = scalar_lea.sflag [#allocation4], %s1849_s24 }
 0x527   : > { %p2207_p13 = pnand %p3064_p12, %p2598_p6 }
 0x529   : > { %p2208_p0 = pneg %p2207_p13 }
 0x52b   : > { %2506 = dma.done.wait (%p2208_p0), %s1850_s26, 1024  }
 0x52c   : > { %2508 = vsyncadd (%p2208_p0), %s1850_s26, 4294966272  ;;  %s3065_s30 = sld [smem:[#allocation16_spill]]  ;;  %p22_p5 = scmp.ge.s32.totalorder %s2619_s14, 4  }
 0x52d   : > { %s3066_s18 = smov %s2515_s19  ;;  %s3067_s19 = smov %s2519_s20 }
 0x52e   : > { %s3069_s21 = smov %s2619_s14  ;;  %24 = sbr.rel (!%p22_p5) target bundleno = 12 (0xc), region = 106 }
 0x532   : > { %s3068_s20 = smov %s3065_s30 }
 0x533   :  { %1856 = vsyncpa [#allocation3], 1 }
 0x534   :  { %1858 = vsyncpa [#allocation3 + $0x1], 1 }
 0x535   :  { %1859 = vsyncpa [#allocation6], 1 }
 0x536   :  { %1861 = vsyncpa [#allocation6 + $0x1], 1 }
 0x537   :  { %1862 = vsyncpa [#allocation9], 1 }
 0x538   :  { %1863 = vsyncpa [#allocation4], 1 }
 0x539   :  { %1865 = vsyncpa [#allocation4 + $0x1], 1 }

</bundles_post_ra>
